<compile_context>
chip_gen: v7x
topology: tpu7x:2x2x1
jax: 0.10.0
libtpu: 0.0.40
codegen_flags: <defaults>
</compile_context>

<pallas_src>
import functools
import math

import jax
import jax.numpy as jnp
from jax.experimental import pallas as pl
from jax.experimental.pallas import tpu as pltpu

# ----------------------------- model config (small, synthetic) -----------------------------
B, N, D = 2, 8, 32          # batch, sequence length, embed dim
NUM_HEADS = 4               # head_dim = 8
HEAD_DIM = D // NUM_HEADS
MLP_DIM = 4 * D             # mlp_ratio = 4
DEPTH = 2
LN_EPS = 1e-6               # timm ViT LayerNorm eps
MASK_NEG = -1e9             # additive mask value for padded keys


# ----------------------------- shared math helpers (kernel + reference) -----------------------------
def _erf(x):
    # Abramowitz & Stegun 7.1.26 polynomial (|err| < 1.5e-7): exact-erf GELU semantics
    # using only exp / mul / add / where on Mosaic.
    a1, a2, a3, a4, a5 = 0.254829592, -0.284496736, 1.421413741, -1.453152027, 1.061405429
    p = 0.3275911
    sgn = jnp.where(x >= 0.0, 1.0, -1.0)
    ax = jnp.abs(x)
    t = 1.0 / (1.0 + p * ax)
    poly = ((((a5 * t + a4) * t + a3) * t + a2) * t + a1) * t
    return sgn * (1.0 - poly * jnp.exp(-ax * ax))


def _gelu(x, approximate=False):
    if approximate:
        # tanh-approximate GELU: the only transcendental runs on the EUP slot (VALU relief);
        # matches torch.nn.GELU(approximate='tanh'), ~3e-3 max abs deviation from exact erf.
        c = math.sqrt(2.0 / math.pi)
        return 0.5 * x * (1.0 + jnp.tanh(c * (x + 0.044715 * x * x * x)))
    # exact (erf-based) GELU: torch.nn.GELU() default semantics.
    return 0.5 * x * (1.0 + _erf(x * (1.0 / math.sqrt(2.0))))


def _layernorm(x, w, b):
    mu = jnp.mean(x, axis=-1, keepdims=True)
    var = jnp.mean((x - mu) ** 2, axis=-1, keepdims=True)
    return (x - mu) * jax.lax.rsqrt(var + LN_EPS) * w + b


def _linear(x, w, b):
    # x: (M, in) f32; w: (out, in) PyTorch layout (f32 or bf16); b: (1, out) f32.
    # Activations are cast to the weight dtype so bf16 weights hit the bf16 MXU;
    # accumulation stays f32 via preferred_element_type.
    y = jax.lax.dot_general(x.astype(w.dtype), w, (((1,), (1,)), ((), ())),
                            preferred_element_type=jnp.float32)
    return y + b


# ----------------------------- fully fused decoder kernel -----------------------------
def decoder_kernel(x_ref, pos_ref, bias_ref,
                   ln1w_ref, ln1b_ref, qkvw_ref, qkvb_ref, pw_ref, pb_ref,
                   ln2w_ref, ln2b_ref, f1w_ref, f1b_ref, f2w_ref, f2b_ref,
                   fnw_ref, fnb_ref,
                   out_ref, x_scr,
                   *, num_heads, batch_tile, n_tok, dim, gelu_approximate):
    d = pl.program_id(1)                       # layer index (inner, "arbitrary" axis)
    last = pl.num_programs(1) - 1
    toks = batch_tile * n_tok                  # slab height: fills sublanes / MXU rows
    hd = dim // num_heads

    @pl.when(d == 0)
    def _():                                   # load this batch tile once; resident across layers
        x_scr[...] = x_ref[...].reshape(toks, dim)

    pos = pos_ref[...].reshape(toks, dim)
    bias = bias_ref[...]                       # (BT, H, N, N) fused rpb+mask, or compact (BT, 1, 1, N)
    n_bias_heads = bias.shape[1]

    ln1w, ln1b = ln1w_ref[0], ln1b_ref[0]      # (1, D)
    ln2w, ln2b = ln2w_ref[0], ln2b_ref[0]
    wqkv, bqkv = qkvw_ref[0], qkvb_ref[0]      # (3D, D), (1, 3D)   (Q rows pre-scaled)
    pw, pb = pw_ref[0], pb_ref[0]              # (D, D), (1, D)
    f1w, f1b = f1w_ref[0], f1b_ref[0]          # (MLP, D), (1, MLP)
    f2w, f2b = f2w_ref[0], f2b_ref[0]          # (D, MLP), (1, D)

    # ---- batch-slab compute: every LN / projection / MLP matmul runs once over all tokens ----
    xin = x_scr[...] + pos                     # (toks, D); pos re-added at every block
    h = _layernorm(xin, ln1w, ln1b)

    qkv = _linear(h, wqkv, bqkv)               # single fused (toks, 3D) matmul
    q, k, v = qkv[:, :dim], qkv[:, dim:2 * dim], qkv[:, 2 * dim:]

    # ---- attention: static per-head loop (H=4), sample-batched via 3-D einsums ----
    # TODO(synk): at real head counts (H>=12) switch to a head-blocked lax.fori_loop /
    #             head-batched dot_general to bound live ranges.
    head_outs = []
    for hh in range(num_heads):
        sl = slice(hh * hd, (hh + 1) * hd)
        qh = q[:, sl].reshape(batch_tile, n_tok, hd)
        kh = k[:, sl].reshape(batch_tile, n_tok, hd)
        vh = v[:, sl].reshape(batch_tile, n_tok, hd)
        logits = jnp.einsum("bqd,bkd->bqk", qh, kh, preferred_element_type=jnp.float32)
        logits = logits + bias[:, hh if n_bias_heads > 1 else 0]   # broadcasts (BT,1,N) mask if no rpb
        m = jnp.max(logits, axis=-1, keepdims=True)
        e = jnp.exp(logits - m)
        # approx reciprocal runs on the EUP slot; attention rows sum to 1 only to ~1e-4.
        p = e * pl.reciprocal(jnp.sum(e, axis=-1, keepdims=True), approx=True)
        oh = jnp.einsum("bqk,bkd->bqd", p, vh, preferred_element_type=jnp.float32)
        head_outs.append(oh.reshape(toks, hd))
    o = jnp.concatenate(head_outs, axis=-1)    # (toks, D): single relayout, ONE output projection
    x1 = xin + _linear(o, pw, pb)

    # ---- MLP (slab) ----
    h2 = _layernorm(x1, ln2w, ln2b)
    h2 = _gelu(_linear(h2, f1w, f1b), gelu_approximate)
    xnew = x1 + _linear(h2, f2w, f2b)
    x_scr[...] = xnew

    # ---- final LayerNorm fused into the last layer's step ----
    @pl.when(d == last)
    def _():
        y = _layernorm(xnew, fnw_ref[...], fnb_ref[...])
        out_ref[...] = y.reshape(batch_tile, n_tok, dim).astype(out_ref.dtype)


# ----------------------------- parameter packing -----------------------------
def _pack_layer_params(block_params, num_heads, param_dtype=jnp.float32):
    """Stack per-layer PyTorch-layout params along a leading depth axis and fuse Q/K/V into
    one (depth, 3D, D) weight (row order [q; k; v]); the 1/sqrt(head_dim) attention scale is
    folded into Q.  Matmul weights are cast to `param_dtype` (bf16 halves weight-stream DMA
    bytes and uses the bf16 MXU on v6e/v7x); LN params, biases and accumulation stay f32."""
    stack = lambda i: jnp.stack([bp[i] for bp in block_params], axis=0)
    l1w, l1b = stack(0), stack(1)                      # (depth, 1, D)
    qw, qb = stack(2), stack(3)                        # (depth, D, D), (depth, 1, D)
    kw, kb = stack(4), stack(5)
    vw, vb = stack(6), stack(7)
    pw, pb = stack(8), stack(9)
    l2w, l2b = stack(10), stack(11)
    f1w, f1b = stack(12), stack(13)
    f2w, f2b = stack(14), stack(15)
    dim = qw.shape[-1]
    scale = 1.0 / math.sqrt(dim // num_heads)
    wqkv = jnp.concatenate([qw * scale, kw, vw], axis=1)     # (depth, 3D, D)
    bqkv = jnp.concatenate([qb * scale, kb, vb], axis=-1)    # (depth, 1, 3D)
    w = lambda a: a.astype(param_dtype)
    return [l1w, l1b, w(wqkv), bqkv, w(pw), pb, l2w, l2b, w(f1w), f1b, w(f2w), f2b]


# ----------------------------- pallas_call wrapper -----------------------------
def make_decoder_call(batch, n_tok, dim, depth, batch_tile, bias_shape, packed_shapes,
                      num_heads, gelu_approximate):
    def layer_spec(shape):
        zeros = (0,) * (len(shape) - 1)
        # Stream this layer's weights each depth step (auto double-buffered by Pallas).
        return pl.BlockSpec((1,) + tuple(shape[1:]), lambda bi, d, _z=zeros: (d,) + _z)

    in_specs = [
        pl.BlockSpec((batch_tile, n_tok, dim), lambda bi, d: (bi, 0, 0)),      # x (resident over depth)
        pl.BlockSpec((batch_tile, n_tok, dim), lambda bi, d: (bi, 0, 0)),      # pos_x (resident)
        pl.BlockSpec((batch_tile,) + tuple(bias_shape[1:]),
                     lambda bi, d: (bi, 0, 0, 0)),                             # attn bias (resident)
    ]
    in_specs += [layer_spec(s) for s in packed_shapes]
    in_specs += [pl.BlockSpec((1, dim), lambda bi, d: (0, 0)),                 # final LN weight
                 pl.BlockSpec((1, dim), lambda bi, d: (0, 0))]                 # final LN bias

    # Explicit VMEM budget (review: v7x has only 64 MiB physical, 32 MiB default scoped):
    # double-buffer every block + headroom, clamped well under any generation's physical VMEM.
    block_shapes = ([(batch_tile, n_tok, dim)] * 3                              # x, pos, out
                    + [(batch_tile,) + tuple(bias_shape[1:])]                   # bias
                    + [(1,) + tuple(s[1:]) for s in packed_shapes]              # streamed weights
                    + [(1, dim)] * 2                                            # final LN
                    + [(batch_tile * n_tok, dim)])                              # x_scr
    vmem_limit = min(max(2 * sum(4 * math.prod(s) for s in block_shapes) + (2 << 20), 4 << 20),
                     64 << 20)

    return pl.pallas_call(
        functools.partial(decoder_kernel, num_heads=num_heads, batch_tile=batch_tile,
                          n_tok=n_tok, dim=dim, gelu_approximate=gelu_approximate),
        out_shape=jax.ShapeDtypeStruct((batch, n_tok, dim), jnp.float32),
        grid_spec=pltpu.PrefetchScalarGridSpec(
            num_scalar_prefetch=0,
            grid=(batch // batch_tile, depth),           # (parallel batch tiles, layers)
            in_specs=in_specs,
            out_specs=pl.BlockSpec((batch_tile, n_tok, dim), lambda bi, d: (bi, 0, 0)),
            scratch_shapes=[pltpu.VMEM((batch_tile * n_tok, dim), jnp.float32)]),
        compiler_params=pltpu.CompilerParams(
            dimension_semantics=("parallel", "arbitrary"),
            vmem_limit_bytes=int(vmem_limit)))


def transformer_decoder_forward(x, pos_x, x_mask, rpb, block_params, final_w, final_b,
                                num_heads=NUM_HEADS, batch_tile=None,
                                param_dtype=jnp.float32, gelu_approximate=False):
    """x, pos_x: (B, N, D) f32; x_mask: (B, N) bool (True = valid) or None;
    rpb: (B, H, N, N) f32 or None.  Returns final hidden states (B, N, D) (header=None)."""
    batch, n_tok, dim = x.shape
    depth = len(block_params)
    assert dim % num_heads == 0
    if batch_tile is None:
        # One fat grid step per core: each layer's weights are streamed exactly once.
        # (At real B on v7x keep >=2 tiles per core so both TensorCores stay busy.)
        batch_tile = batch
    assert batch % batch_tile == 0

    if x_mask is None:
        mask_bias = jnp.zeros((batch, 1, 1, n_tok), jnp.float32)
    else:
        mask_bias = jnp.where(x_mask, 0.0, MASK_NEG).astype(jnp.float32)[:, None, None, :]
    if rpb is None:
        attn_bias = mask_bias                              # compact (B,1,1,N): no HxN broadcast in HBM
    else:
        attn_bias = (rpb + mask_bias).astype(jnp.float32)  # pre-fused additive bias (B,H,N,N)

    packed = _pack_layer_params(block_params, num_heads, param_dtype)
    call = make_decoder_call(batch, n_tok, dim, depth, batch_tile, attn_bias.shape,
                             [p.shape for p in packed], num_heads, gelu_approximate)
    return call(x, pos_x, attn_bias, *packed, final_w, final_b)


# ----------------------------- deterministic parameter init -----------------------------
def init_block_params(key, dim, mlp_dim):
    ks = jax.random.split(key, 6)
    zeros = lambda s: jnp.zeros(s, jnp.float32)
    w = lambda k, s: 0.02 * jax.random.normal(k, s, jnp.float32)
    return [
        jnp.ones((1, dim), jnp.float32), zeros((1, dim)),        # ln1
        w(ks[0], (dim, dim)), zeros((1, dim)),                   # q
        w(ks[1], (dim, dim)), zeros((1, dim)),                   # k
        w(ks[2], (dim, dim)), zeros((1, dim)),                   # v
        w(ks[3], (dim, dim)), zeros((1, dim)),                   # proj
        jnp.ones((1, dim), jnp.float32), zeros((1, dim)),        # ln2
        w(ks[4], (mlp_dim, dim)), zeros((1, mlp_dim)),           # fc1
        w(ks[5], (dim, mlp_dim)), zeros((1, dim)),               # fc2
    ]


# ----------------------------- pure-JAX reference (same math, no Pallas) -----------------------------
def _ref_forward(x, pos, x_mask, rpb, block_params, final_w, final_b,
                 num_heads=NUM_HEADS, gelu_approximate=False):
    batch, n_tok, dim = x.shape
    hd = dim // num_heads
    if x_mask is None:
        mask_bias = jnp.zeros((batch, 1, 1, n_tok), jnp.float32)
    else:
        mask_bias = jnp.where(x_mask, 0.0, MASK_NEG).astype(jnp.float32)[:, None, None, :]
    bias = mask_bias if rpb is None else rpb + mask_bias
    for bp in block_params:
        (l1w, l1b, qw, qb, kw, kb, vw, vb, pw, pb, l2w, l2b, f1w, f1b, f2w, f2b) = bp
        xin = x + pos
        h = _layernorm(xin, l1w, l1b)
        q = (h @ qw.T + qb).reshape(batch, n_tok, num_heads, hd)
        k = (h @ kw.T + kb).reshape(batch, n_tok, num_heads, hd)
        v = (h @ vw.T + vb).reshape(batch, n_tok, num_heads, hd)
        logits = jnp.einsum("bqhd,bkhd->bhqk", q, k) / math.sqrt(hd) + bias
        attn = jax.nn.softmax(logits, axis=-1)
        o = jnp.einsum("bhqk,bkhd->bqhd", attn, v).reshape(batch, n_tok, dim)
        x = xin + o @ pw.T + pb
        h2 = _layernorm(x, l2w, l2b)
        x = x + _gelu(h2 @ f1w.T + f1b, gelu_approximate) @ f2w.T + f2b
    return _layernorm(x, final_w, final_b)


# ----------------------------- main -----------------------------
if __name__ == "__main__":
    root = jax.random.PRNGKey(0)
    k_x, k_pos, k_rpb, k_params = jax.random.split(root, 4)

    x = jax.random.normal(k_x, (B, N, D), jnp.float32)
    pos_x = jax.random.normal(k_pos, (B, N, D), jnp.float32)
    # key-padding mask: True = valid token; last two tokens of sample 1 are padding
    x_mask = jnp.array([[True] * N, [True] * (N - 2) + [False, False]], dtype=bool)
    rpb = 0.1 * jax.random.normal(k_rpb, (B, NUM_HEADS, N, N), jnp.float32)

    pkeys = jax.random.split(k_params, DEPTH)
    block_params = [init_block_params(pkeys[i], D, MLP_DIM) for i in range(DEPTH)]
    final_w = jnp.ones((1, D), jnp.float32)
    final_b = jnp.zeros((1, D), jnp.float32)

    # --- case 1: rel-pos-bias + key-padding mask, exact-erf GELU, f32 weights ---
    out = jax.block_until_ready(
        transformer_decoder_forward(x, pos_x, x_mask, rpb, block_params, final_w, final_b))
    ref = _ref_forward(x, pos_x, x_mask, rpb, block_params, final_w, final_b)
    assert out.shape == (B, N, D)
    assert bool(jnp.all(jnp.isfinite(out)))
    # 1e-3 tolerance: the softmax denominator uses the EUP approximate reciprocal.
    assert bool(jnp.allclose(out, ref, rtol=1e-3, atol=1e-3)), "case 1 mismatch vs JAX reference"

    # --- case 2: rpb=None (compact (B,1,1,N) bias path) + tanh-approximate GELU ---
    out2 = jax.block_until_ready(
        transformer_decoder_forward(x, pos_x, x_mask, None, block_params, final_w, final_b,
                                    gelu_approximate=True))
    ref2 = _ref_forward(x, pos_x, x_mask, None, block_params, final_w, final_b,
                        gelu_approximate=True)
    assert bool(jnp.allclose(out2, ref2, rtol=1e-3, atol=1e-3)), "case 2 mismatch vs JAX reference"

    # --- case 3: bf16 weight streaming (v6e/v7x MXU path); loose sanity tolerance vs f32 ref ---
    out3 = jax.block_until_ready(
        transformer_decoder_forward(x, pos_x, x_mask, rpb, block_params, final_w, final_b,
                                    param_dtype=jnp.bfloat16))
    assert bool(jnp.all(jnp.isfinite(out3)))
    assert bool(jnp.allclose(out3, ref, rtol=1e-1, atol=1e-1)), "case 3 (bf16) mismatch"

    print("KERNEL_OK")
</pallas_src>

<mosaic_0001>
module attributes {stable_mosaic.version = 11 : i64} {
  func.func @decoder_kernel(%arg0: i32, %arg1: i32, %arg2: memref<2x8x32xf32, #tpu.memory_space<vmem>>, %arg3: memref<2x8x32xf32, #tpu.memory_space<vmem>>, %arg4: memref<2x4x8x8xf32, #tpu.memory_space<vmem>>, %arg5: memref<1x1x32xf32, #tpu.memory_space<vmem>>, %arg6: memref<1x1x32xf32, #tpu.memory_space<vmem>>, %arg7: memref<1x96x32xf32, #tpu.memory_space<vmem>>, %arg8: memref<1x1x96xf32, #tpu.memory_space<vmem>>, %arg9: memref<1x32x32xf32, #tpu.memory_space<vmem>>, %arg10: memref<1x1x32xf32, #tpu.memory_space<vmem>>, %arg11: memref<1x1x32xf32, #tpu.memory_space<vmem>>, %arg12: memref<1x1x32xf32, #tpu.memory_space<vmem>>, %arg13: memref<1x128x32xf32, #tpu.memory_space<vmem>>, %arg14: memref<1x1x128xf32, #tpu.memory_space<vmem>>, %arg15: memref<1x32x128xf32, #tpu.memory_space<vmem>>, %arg16: memref<1x1x32xf32, #tpu.memory_space<vmem>>, %arg17: memref<1x32xf32, #tpu.memory_space<vmem>>, %arg18: memref<1x32xf32, #tpu.memory_space<vmem>>, %arg19: memref<2x8x32xf32, #tpu.memory_space<vmem>>, %arg20: memref<16x32xf32, #tpu.memory_space<vmem>>) attributes {dimension_semantics = [#tpu.dimension_semantics<parallel>, #tpu.dimension_semantics<arbitrary>], iteration_bounds = array<i64: 1, 2>, scalar_prefetch = 0 : i64, scratch_operands = 1 : i64, tpu.core_type = #tpu.core_type<tc>, window_params = [{transform_indices = @transform_0, window_bounds = array<i64: 2, 8, 32>}, {transform_indices = @transform_1, window_bounds = array<i64: 2, 8, 32>}, {transform_indices = @transform_2, window_bounds = array<i64: 2, 4, 8, 8>}, {transform_indices = @transform_3, window_bounds = array<i64: 1, 1, 32>}, {transform_indices = @transform_4, window_bounds = array<i64: 1, 1, 32>}, {transform_indices = @transform_5, window_bounds = array<i64: 1, 96, 32>}, {transform_indices = @transform_6, window_bounds = array<i64: 1, 1, 96>}, {transform_indices = @transform_7, window_bounds = array<i64: 1, 32, 32>}, {transform_indices = @transform_8, window_bounds = array<i64: 1, 1, 32>}, {transform_indices = @transform_9, window_bounds = array<i64: 1, 1, 32>}, {transform_indices = @transform_10, window_bounds = array<i64: 1, 1, 32>}, {transform_indices = @transform_11, window_bounds = array<i64: 1, 128, 32>}, {transform_indices = @transform_12, window_bounds = array<i64: 1, 1, 128>}, {transform_indices = @transform_13, window_bounds = array<i64: 1, 32, 128>}, {transform_indices = @transform_14, window_bounds = array<i64: 1, 1, 32>}, {pipeline_mode = #tpu.pipeline_mode<synchronous>, transform_indices = @transform_15, window_bounds = array<i64: 1, 32>}, {pipeline_mode = #tpu.pipeline_mode<synchronous>, transform_indices = @transform_16, window_bounds = array<i64: 1, 32>}, {transform_indices = @transform_17, window_bounds = array<i64: 2, 8, 32>}]} {
    %c0_i32 = arith.constant 0 : i32
    %0 = arith.cmpi eq, %arg1, %c0_i32 : i32
    %1 = arith.extui %0 : i1 to i32
    %c0_i32_0 = arith.constant 0 : i32
    %2 = arith.cmpi ne, %1, %c0_i32_0 : i32
    scf.if %2 {
      %c0_93 = arith.constant 0 : index
      %c0_94 = arith.constant 0 : index
      %c0_95 = arith.constant 0 : index
      %227 = vector.load %arg2[%c0_93, %c0_94, %c0_95] : memref<2x8x32xf32, #tpu.memory_space<vmem>>, vector<2x8x32xf32>
      %228 = vector.shape_cast %227 : vector<2x8x32xf32> to vector<16x32xf32>
      %c0_96 = arith.constant 0 : index
      %c0_97 = arith.constant 0 : index
      %229 = vector.load %arg20[%c0_96, %c0_97] : memref<16x32xf32, #tpu.memory_space<vmem>>, vector<16x32xf32>
      tpu.vector_store %arg20[%c0_96, %c0_97], %228 {strides = array<i32>} : memref<16x32xf32, #tpu.memory_space<vmem>>, vector<16x32xf32>,
    } else {
    }
    %c0 = arith.constant 0 : index
    %c0_1 = arith.constant 0 : index
    %c0_2 = arith.constant 0 : index
    %3 = vector.load %arg3[%c0, %c0_1, %c0_2] : memref<2x8x32xf32, #tpu.memory_space<vmem>>, vector<2x8x32xf32>
    %4 = vector.shape_cast %3 : vector<2x8x32xf32> to vector<16x32xf32>
    %c0_3 = arith.constant 0 : index
    %c0_4 = arith.constant 0 : index
    %c0_5 = arith.constant 0 : index
    %c0_6 = arith.constant 0 : index
    %5 = vector.load %arg4[%c0_3, %c0_4, %c0_5, %c0_6] : memref<2x4x8x8xf32, #tpu.memory_space<vmem>>, vector<2x4x8x8xf32>
    %c0_7 = arith.constant 0 : index
    %c0_8 = arith.constant 0 : index
    %c0_9 = arith.constant 0 : index
    %6 = vector.load %arg5[%c0_7, %c0_8, %c0_9] : memref<1x1x32xf32, #tpu.memory_space<vmem>>, vector<1x1x32xf32>
    %7 = vector.shape_cast %6 : vector<1x1x32xf32> to vector<1x32xf32>
    %c0_10 = arith.constant 0 : index
    %c0_11 = arith.constant 0 : index
    %c0_12 = arith.constant 0 : index
    %8 = vector.load %arg6[%c0_10, %c0_11, %c0_12] : memref<1x1x32xf32, #tpu.memory_space<vmem>>, vector<1x1x32xf32>
    %9 = vector.shape_cast %8 : vector<1x1x32xf32> to vector<1x32xf32>
    %c0_13 = arith.constant 0 : index
    %c0_14 = arith.constant 0 : index
    %c0_15 = arith.constant 0 : index
    %10 = vector.load %arg11[%c0_13, %c0_14, %c0_15] : memref<1x1x32xf32, #tpu.memory_space<vmem>>, vector<1x1x32xf32>
    %11 = vector.shape_cast %10 : vector<1x1x32xf32> to vector<1x32xf32>
    %c0_16 = arith.constant 0 : index
    %c0_17 = arith.constant 0 : index
    %c0_18 = arith.constant 0 : index
    %12 = vector.load %arg12[%c0_16, %c0_17, %c0_18] : memref<1x1x32xf32, #tpu.memory_space<vmem>>, vector<1x1x32xf32>
    %13 = vector.shape_cast %12 : vector<1x1x32xf32> to vector<1x32xf32>
    %c0_19 = arith.constant 0 : index
    %c0_20 = arith.constant 0 : index
    %c0_21 = arith.constant 0 : index
    %14 = vector.load %arg7[%c0_19, %c0_20, %c0_21] : memref<1x96x32xf32, #tpu.memory_space<vmem>>, vector<1x96x32xf32>
    %15 = vector.shape_cast %14 : vector<1x96x32xf32> to vector<96x32xf32>
    %c0_22 = arith.constant 0 : index
    %c0_23 = arith.constant 0 : index
    %c0_24 = arith.constant 0 : index
    %16 = vector.load %arg8[%c0_22, %c0_23, %c0_24] : memref<1x1x96xf32, #tpu.memory_space<vmem>>, vector<1x1x96xf32>
    %17 = vector.shape_cast %16 : vector<1x1x96xf32> to vector<1x96xf32>
    %c0_25 = arith.constant 0 : index
    %c0_26 = arith.constant 0 : index
    %c0_27 = arith.constant 0 : index
    %18 = vector.load %arg9[%c0_25, %c0_26, %c0_27] : memref<1x32x32xf32, #tpu.memory_space<vmem>>, vector<1x32x32xf32>
    %19 = vector.shape_cast %18 : vector<1x32x32xf32> to vector<32x32xf32>
    %c0_28 = arith.constant 0 : index
    %c0_29 = arith.constant 0 : index
    %c0_30 = arith.constant 0 : index
    %20 = vector.load %arg10[%c0_28, %c0_29, %c0_30] : memref<1x1x32xf32, #tpu.memory_space<vmem>>, vector<1x1x32xf32>
    %21 = vector.shape_cast %20 : vector<1x1x32xf32> to vector<1x32xf32>
    %c0_31 = arith.constant 0 : index
    %c0_32 = arith.constant 0 : index
    %c0_33 = arith.constant 0 : index
    %22 = vector.load %arg13[%c0_31, %c0_32, %c0_33] : memref<1x128x32xf32, #tpu.memory_space<vmem>>, vector<1x128x32xf32>
    %23 = vector.shape_cast %22 : vector<1x128x32xf32> to vector<128x32xf32>
    %c0_34 = arith.constant 0 : index
    %c0_35 = arith.constant 0 : index
    %c0_36 = arith.constant 0 : index
    %24 = vector.load %arg14[%c0_34, %c0_35, %c0_36] : memref<1x1x128xf32, #tpu.memory_space<vmem>>, vector<1x1x128xf32>
    %25 = vector.shape_cast %24 : vector<1x1x128xf32> to vector<1x128xf32>
    %c0_37 = arith.constant 0 : index
    %c0_38 = arith.constant 0 : index
    %c0_39 = arith.constant 0 : index
    %26 = vector.load %arg15[%c0_37, %c0_38, %c0_39] : memref<1x32x128xf32, #tpu.memory_space<vmem>>, vector<1x32x128xf32>
    %27 = vector.shape_cast %26 : vector<1x32x128xf32> to vector<32x128xf32>
    %c0_40 = arith.constant 0 : index
    %c0_41 = arith.constant 0 : index
    %c0_42 = arith.constant 0 : index
    %28 = vector.load %arg16[%c0_40, %c0_41, %c0_42] : memref<1x1x32xf32, #tpu.memory_space<vmem>>, vector<1x1x32xf32>
    %29 = vector.shape_cast %28 : vector<1x1x32xf32> to vector<1x32xf32>
    %c0_43 = arith.constant 0 : index
    %c0_44 = arith.constant 0 : index
    %30 = vector.load %arg20[%c0_43, %c0_44] : memref<16x32xf32, #tpu.memory_space<vmem>>, vector<16x32xf32>
    %31 = arith.addf %30, %4 : vector<16x32xf32>
    %cst = arith.constant dense<0.000000e+00> : vector<16xf32>
    %32 = vector.multi_reduction <add>, %31, %cst [1] : vector<16x32xf32> to vector<16xf32>
    %33 = vector.shape_cast %32 : vector<16xf32> to vector<16x1xf32>
    %cst_45 = arith.constant 3.200000e+01 : f32
    %34 = vector.broadcast %cst_45 : f32 to vector<16x1xf32>
    %35 = arith.divf %33, %34 : vector<16x1xf32>
    %36 = vector.broadcast %35 : vector<16x1xf32> to vector<16x32xf32>
    %37 = arith.subf %31, %36 : vector<16x32xf32>
    %38 = arith.mulf %37, %37 : vector<16x32xf32>
    %cst_46 = arith.constant dense<0.000000e+00> : vector<16xf32>
    %39 = vector.multi_reduction <add>, %38, %cst_46 [1] : vector<16x32xf32> to vector<16xf32>
    %40 = vector.shape_cast %39 : vector<16xf32> to vector<16x1xf32>
    %cst_47 = arith.constant 3.200000e+01 : f32
    %41 = vector.broadcast %cst_47 : f32 to vector<16x1xf32>
    %42 = arith.divf %40, %41 : vector<16x1xf32>
    %43 = vector.broadcast %35 : vector<16x1xf32> to vector<16x32xf32>
    %44 = arith.subf %31, %43 : vector<16x32xf32>
    %cst_48 = arith.constant 9.99999997E-7 : f32
    %45 = vector.broadcast %cst_48 : f32 to vector<16x1xf32>
    %46 = arith.addf %42, %45 : vector<16x1xf32>
    %47 = math.rsqrt %46 : vector<16x1xf32>
    %48 = vector.broadcast %47 : vector<16x1xf32> to vector<16x32xf32>
    %49 = arith.mulf %44, %48 : vector<16x32xf32>
    %50 = vector.broadcast %7 : vector<1x32xf32> to vector<16x32xf32>
    %51 = arith.mulf %49, %50 : vector<16x32xf32>
    %52 = vector.broadcast %9 : vector<1x32xf32> to vector<16x32xf32>
    %53 = arith.addf %51, %52 : vector<16x32xf32>
    %cst_49 = arith.constant dense<0.000000e+00> : vector<16x96xf32>
    %54 = tpu.matmul %53, %15, %cst_49 {dimension_numbers = #tpu.dot_dimension_numbers<[1], [1], [0], [0], [0, 0, 1, 0], [], []>} : vector<16x32xf32>, vector<96x32xf32>, vector<16x96xf32> -> vector<16x96xf32>
    %55 = vector.broadcast %17 : vector<1x96xf32> to vector<16x96xf32>
    %56 = arith.addf %54, %55 : vector<16x96xf32>
    %57 = vector.extract_strided_slice %56 {offsets = [0, 0], sizes = [16, 32], strides = [1, 1]} : vector<16x96xf32> to vector<16x32xf32>
    %58 = vector.extract_strided_slice %56 {offsets = [0, 32], sizes = [16, 32], strides = [1, 1]} : vector<16x96xf32> to vector<16x32xf32>
    %59 = vector.extract_strided_slice %56 {offsets = [0, 64], sizes = [16, 32], strides = [1, 1]} : vector<16x96xf32> to vector<16x32xf32>
    %60 = vector.extract_strided_slice %57 {offsets = [0, 0], sizes = [16, 8], strides = [1, 1]} : vector<16x32xf32> to vector<16x8xf32>
    %61 = vector.shape_cast %60 : vector<16x8xf32> to vector<2x8x8xf32>
    %62 = vector.extract_strided_slice %58 {offsets = [0, 0], sizes = [16, 8], strides = [1, 1]} : vector<16x32xf32> to vector<16x8xf32>
    %63 = vector.shape_cast %62 : vector<16x8xf32> to vector<2x8x8xf32>
    %64 = vector.extract_strided_slice %59 {offsets = [0, 0], sizes = [16, 8], strides = [1, 1]} : vector<16x32xf32> to vector<16x8xf32>
    %65 = vector.shape_cast %64 : vector<16x8xf32> to vector<2x8x8xf32>
    "tpu.trace_start"() <{level = 10 : i32, message = "bqd,bkd->bqk"}> : () -> ()
    %cst_50 = arith.constant dense<0.000000e+00> : vector<2x8x8xf32>
    %66 = tpu.matmul %61, %63, %cst_50 {dimension_numbers = #tpu.dot_dimension_numbers<[2], [2], [1], [1], [0, 0, 0, 1, 1, 1], [0], [0]>} : vector<2x8x8xf32>, vector<2x8x8xf32>, vector<2x8x8xf32> -> vector<2x8x8xf32>
    "tpu.trace_stop"() : () -> ()
    %67 = vector.extract_strided_slice %5 {offsets = [0, 0, 0, 0], sizes = [2, 1, 8, 8], strides = [1, 1, 1, 1]} : vector<2x4x8x8xf32> to vector<2x1x8x8xf32>
    %68 = vector.shape_cast %67 : vector<2x1x8x8xf32> to vector<2x8x8xf32>
    %69 = arith.addf %66, %68 : vector<2x8x8xf32>
    %cst_51 = arith.constant dense<0xFF800000> : vector<2x8xf32>
    %70 = vector.multi_reduction <maximumf>, %69, %cst_51 [2] : vector<2x8x8xf32> to vector<2x8xf32>
    %71 = vector.shape_cast %70 : vector<2x8xf32> to vector<2x8x1xf32>
    %72 = vector.broadcast %71 : vector<2x8x1xf32> to vector<2x8x8xf32>
    %73 = arith.subf %69, %72 : vector<2x8x8xf32>
    %74 = math.exp %73 : vector<2x8x8xf32>
    %cst_52 = arith.constant dense<0.000000e+00> : vector<2x8xf32>
    %75 = vector.multi_reduction <add>, %74, %cst_52 [2] : vector<2x8x8xf32> to vector<2x8xf32>
    %76 = vector.shape_cast %75 : vector<2x8xf32> to vector<2x8x1xf32>
    %77 = tpu.reciprocal %76 {approx = true} : vector<2x8x1xf32> -> vector<2x8x1xf32>
    %78 = vector.broadcast %77 : vector<2x8x1xf32> to vector<2x8x8xf32>
    %79 = arith.mulf %74, %78 : vector<2x8x8xf32>
    "tpu.trace_start"() <{level = 10 : i32, message = "bqk,bkd->bqd"}> : () -> ()
    %cst_53 = arith.constant dense<0.000000e+00> : vector<2x8x8xf32>
    %80 = tpu.matmul %79, %65, %cst_53 {dimension_numbers = #tpu.dot_dimension_numbers<[2], [1], [1], [2], [0, 0, 0, 1, 1, 2], [0], [0]>} : vector<2x8x8xf32>, vector<2x8x8xf32>, vector<2x8x8xf32> -> vector<2x8x8xf32>
    "tpu.trace_stop"() : () -> ()
    %81 = vector.shape_cast %80 : vector<2x8x8xf32> to vector<16x8xf32>
    %82 = vector.extract_strided_slice %57 {offsets = [0, 8], sizes = [16, 8], strides = [1, 1]} : vector<16x32xf32> to vector<16x8xf32>
    %83 = vector.shape_cast %82 : vector<16x8xf32> to vector<2x8x8xf32>
    %84 = vector.extract_strided_slice %58 {offsets = [0, 8], sizes = [16, 8], strides = [1, 1]} : vector<16x32xf32> to vector<16x8xf32>
    %85 = vector.shape_cast %84 : vector<16x8xf32> to vector<2x8x8xf32>
    %86 = vector.extract_strided_slice %59 {offsets = [0, 8], sizes = [16, 8], strides = [1, 1]} : vector<16x32xf32> to vector<16x8xf32>
    %87 = vector.shape_cast %86 : vector<16x8xf32> to vector<2x8x8xf32>
    "tpu.trace_start"() <{level = 10 : i32, message = "bqd,bkd->bqk"}> : () -> ()
    %cst_54 = arith.constant dense<0.000000e+00> : vector<2x8x8xf32>
    %88 = tpu.matmul %83, %85, %cst_54 {dimension_numbers = #tpu.dot_dimension_numbers<[2], [2], [1], [1], [0, 0, 0, 1, 1, 1], [0], [0]>} : vector<2x8x8xf32>, vector<2x8x8xf32>, vector<2x8x8xf32> -> vector<2x8x8xf32>
    "tpu.trace_stop"() : () -> ()
    %89 = vector.extract_strided_slice %5 {offsets = [0, 1, 0, 0], sizes = [2, 1, 8, 8], strides = [1, 1, 1, 1]} : vector<2x4x8x8xf32> to vector<2x1x8x8xf32>
    %90 = vector.shape_cast %89 : vector<2x1x8x8xf32> to vector<2x8x8xf32>
    %91 = arith.addf %88, %90 : vector<2x8x8xf32>
    %cst_55 = arith.constant dense<0xFF800000> : vector<2x8xf32>
    %92 = vector.multi_reduction <maximumf>, %91, %cst_55 [2] : vector<2x8x8xf32> to vector<2x8xf32>
    %93 = vector.shape_cast %92 : vector<2x8xf32> to vector<2x8x1xf32>
    %94 = vector.broadcast %93 : vector<2x8x1xf32> to vector<2x8x8xf32>
    %95 = arith.subf %91, %94 : vector<2x8x8xf32>
    %96 = math.exp %95 : vector<2x8x8xf32>
    %cst_56 = arith.constant dense<0.000000e+00> : vector<2x8xf32>
    %97 = vector.multi_reduction <add>, %96, %cst_56 [2] : vector<2x8x8xf32> to vector<2x8xf32>
    %98 = vector.shape_cast %97 : vector<2x8xf32> to vector<2x8x1xf32>
    %99 = tpu.reciprocal %98 {approx = true} : vector<2x8x1xf32> -> vector<2x8x1xf32>
    %100 = vector.broadcast %99 : vector<2x8x1xf32> to vector<2x8x8xf32>
    %101 = arith.mulf %96, %100 : vector<2x8x8xf32>
    "tpu.trace_start"() <{level = 10 : i32, message = "bqk,bkd->bqd"}> : () -> ()
    %cst_57 = arith.constant dense<0.000000e+00> : vector<2x8x8xf32>
    %102 = tpu.matmul %101, %87, %cst_57 {dimension_numbers = #tpu.dot_dimension_numbers<[2], [1], [1], [2], [0, 0, 0, 1, 1, 2], [0], [0]>} : vector<2x8x8xf32>, vector<2x8x8xf32>, vector<2x8x8xf32> -> vector<2x8x8xf32>
    "tpu.trace_stop"() : () -> ()
    %103 = vector.shape_cast %102 : vector<2x8x8xf32> to vector<16x8xf32>
    %104 = vector.extract_strided_slice %57 {offsets = [0, 16], sizes = [16, 8], strides = [1, 1]} : vector<16x32xf32> to vector<16x8xf32>
    %105 = vector.shape_cast %104 : vector<16x8xf32> to vector<2x8x8xf32>
    %106 = vector.extract_strided_slice %58 {offsets = [0, 16], sizes = [16, 8], strides = [1, 1]} : vector<16x32xf32> to vector<16x8xf32>
    %107 = vector.shape_cast %106 : vector<16x8xf32> to vector<2x8x8xf32>
    %108 = vector.extract_strided_slice %59 {offsets = [0, 16], sizes = [16, 8], strides = [1, 1]} : vector<16x32xf32> to vector<16x8xf32>
    %109 = vector.shape_cast %108 : vector<16x8xf32> to vector<2x8x8xf32>
    "tpu.trace_start"() <{level = 10 : i32, message = "bqd,bkd->bqk"}> : () -> ()
    %cst_58 = arith.constant dense<0.000000e+00> : vector<2x8x8xf32>
    %110 = tpu.matmul %105, %107, %cst_58 {dimension_numbers = #tpu.dot_dimension_numbers<[2], [2], [1], [1], [0, 0, 0, 1, 1, 1], [0], [0]>} : vector<2x8x8xf32>, vector<2x8x8xf32>, vector<2x8x8xf32> -> vector<2x8x8xf32>
    "tpu.trace_stop"() : () -> ()
    %111 = vector.extract_strided_slice %5 {offsets = [0, 2, 0, 0], sizes = [2, 1, 8, 8], strides = [1, 1, 1, 1]} : vector<2x4x8x8xf32> to vector<2x1x8x8xf32>
    %112 = vector.shape_cast %111 : vector<2x1x8x8xf32> to vector<2x8x8xf32>
    %113 = arith.addf %110, %112 : vector<2x8x8xf32>
    %cst_59 = arith.constant dense<0xFF800000> : vector<2x8xf32>
    %114 = vector.multi_reduction <maximumf>, %113, %cst_59 [2] : vector<2x8x8xf32> to vector<2x8xf32>
    %115 = vector.shape_cast %114 : vector<2x8xf32> to vector<2x8x1xf32>
    %116 = vector.broadcast %115 : vector<2x8x1xf32> to vector<2x8x8xf32>
    %117 = arith.subf %113, %116 : vector<2x8x8xf32>
    %118 = math.exp %117 : vector<2x8x8xf32>
    %cst_60 = arith.constant dense<0.000000e+00> : vector<2x8xf32>
    %119 = vector.multi_reduction <add>, %118, %cst_60 [2] : vector<2x8x8xf32> to vector<2x8xf32>
    %120 = vector.shape_cast %119 : vector<2x8xf32> to vector<2x8x1xf32>
    %121 = tpu.reciprocal %120 {approx = true} : vector<2x8x1xf32> -> vector<2x8x1xf32>
    %122 = vector.broadcast %121 : vector<2x8x1xf32> to vector<2x8x8xf32>
    %123 = arith.mulf %118, %122 : vector<2x8x8xf32>
    "tpu.trace_start"() <{level = 10 : i32, message = "bqk,bkd->bqd"}> : () -> ()
    %cst_61 = arith.constant dense<0.000000e+00> : vector<2x8x8xf32>
    %124 = tpu.matmul %123, %109, %cst_61 {dimension_numbers = #tpu.dot_dimension_numbers<[2], [1], [1], [2], [0, 0, 0, 1, 1, 2], [0], [0]>} : vector<2x8x8xf32>, vector<2x8x8xf32>, vector<2x8x8xf32> -> vector<2x8x8xf32>
    "tpu.trace_stop"() : () -> ()
    %125 = vector.shape_cast %124 : vector<2x8x8xf32> to vector<16x8xf32>
    %126 = vector.extract_strided_slice %57 {offsets = [0, 24], sizes = [16, 8], strides = [1, 1]} : vector<16x32xf32> to vector<16x8xf32>
    %127 = vector.shape_cast %126 : vector<16x8xf32> to vector<2x8x8xf32>
    %128 = vector.extract_strided_slice %58 {offsets = [0, 24], sizes = [16, 8], strides = [1, 1]} : vector<16x32xf32> to vector<16x8xf32>
    %129 = vector.shape_cast %128 : vector<16x8xf32> to vector<2x8x8xf32>
    %130 = vector.extract_strided_slice %59 {offsets = [0, 24], sizes = [16, 8], strides = [1, 1]} : vector<16x32xf32> to vector<16x8xf32>
    %131 = vector.shape_cast %130 : vector<16x8xf32> to vector<2x8x8xf32>
    "tpu.trace_start"() <{level = 10 : i32, message = "bqd,bkd->bqk"}> : () -> ()
    %cst_62 = arith.constant dense<0.000000e+00> : vector<2x8x8xf32>
    %132 = tpu.matmul %127, %129, %cst_62 {dimension_numbers = #tpu.dot_dimension_numbers<[2], [2], [1], [1], [0, 0, 0, 1, 1, 1], [0], [0]>} : vector<2x8x8xf32>, vector<2x8x8xf32>, vector<2x8x8xf32> -> vector<2x8x8xf32>
    "tpu.trace_stop"() : () -> ()
    %133 = vector.extract_strided_slice %5 {offsets = [0, 3, 0, 0], sizes = [2, 1, 8, 8], strides = [1, 1, 1, 1]} : vector<2x4x8x8xf32> to vector<2x1x8x8xf32>
    %134 = vector.shape_cast %133 : vector<2x1x8x8xf32> to vector<2x8x8xf32>
    %135 = arith.addf %132, %134 : vector<2x8x8xf32>
    %cst_63 = arith.constant dense<0xFF800000> : vector<2x8xf32>
    %136 = vector.multi_reduction <maximumf>, %135, %cst_63 [2] : vector<2x8x8xf32> to vector<2x8xf32>
    %137 = vector.shape_cast %136 : vector<2x8xf32> to vector<2x8x1xf32>
    %138 = vector.broadcast %137 : vector<2x8x1xf32> to vector<2x8x8xf32>
    %139 = arith.subf %135, %138 : vector<2x8x8xf32>
    %140 = math.exp %139 : vector<2x8x8xf32>
    %cst_64 = arith.constant dense<0.000000e+00> : vector<2x8xf32>
    %141 = vector.multi_reduction <add>, %140, %cst_64 [2] : vector<2x8x8xf32> to vector<2x8xf32>
    %142 = vector.shape_cast %141 : vector<2x8xf32> to vector<2x8x1xf32>
    %143 = tpu.reciprocal %142 {approx = true} : vector<2x8x1xf32> -> vector<2x8x1xf32>
    %144 = vector.broadcast %143 : vector<2x8x1xf32> to vector<2x8x8xf32>
    %145 = arith.mulf %140, %144 : vector<2x8x8xf32>
    "tpu.trace_start"() <{level = 10 : i32, message = "bqk,bkd->bqd"}> : () -> ()
    %cst_65 = arith.constant dense<0.000000e+00> : vector<2x8x8xf32>
    %146 = tpu.matmul %145, %131, %cst_65 {dimension_numbers = #tpu.dot_dimension_numbers<[2], [1], [1], [2], [0, 0, 0, 1, 1, 2], [0], [0]>} : vector<2x8x8xf32>, vector<2x8x8xf32>, vector<2x8x8xf32> -> vector<2x8x8xf32>
    "tpu.trace_stop"() : () -> ()
    %147 = vector.shape_cast %146 : vector<2x8x8xf32> to vector<16x8xf32>
    %148 = tpu.concatenate %81, %103, %125, %147 in 1 : vector<16x8xf32>, vector<16x8xf32>, vector<16x8xf32>, vector<16x8xf32> -> vector<16x32xf32>
    %cst_66 = arith.constant dense<0.000000e+00> : vector<16x32xf32>
    %149 = tpu.matmul %148, %19, %cst_66 {dimension_numbers = #tpu.dot_dimension_numbers<[1], [1], [0], [0], [0, 0, 1, 0], [], []>} : vector<16x32xf32>, vector<32x32xf32>, vector<16x32xf32> -> vector<16x32xf32>
    %150 = vector.broadcast %21 : vector<1x32xf32> to vector<16x32xf32>
    %151 = arith.addf %149, %150 : vector<16x32xf32>
    %152 = arith.addf %31, %151 : vector<16x32xf32>
    %cst_67 = arith.constant dense<0.000000e+00> : vector<16xf32>
    %153 = vector.multi_reduction <add>, %152, %cst_67 [1] : vector<16x32xf32> to vector<16xf32>
    %154 = vector.shape_cast %153 : vector<16xf32> to vector<16x1xf32>
    %cst_68 = arith.constant 3.200000e+01 : f32
    %155 = vector.broadcast %cst_68 : f32 to vector<16x1xf32>
    %156 = arith.divf %154, %155 : vector<16x1xf32>
    %157 = vector.broadcast %156 : vector<16x1xf32> to vector<16x32xf32>
    %158 = arith.subf %152, %157 : vector<16x32xf32>
    %159 = arith.mulf %158, %158 : vector<16x32xf32>
    %cst_69 = arith.constant dense<0.000000e+00> : vector<16xf32>
    %160 = vector.multi_reduction <add>, %159, %cst_69 [1] : vector<16x32xf32> to vector<16xf32>
    %161 = vector.shape_cast %160 : vector<16xf32> to vector<16x1xf32>
    %cst_70 = arith.constant 3.200000e+01 : f32
    %162 = vector.broadcast %cst_70 : f32 to vector<16x1xf32>
    %163 = arith.divf %161, %162 : vector<16x1xf32>
    %164 = vector.broadcast %156 : vector<16x1xf32> to vector<16x32xf32>
    %165 = arith.subf %152, %164 : vector<16x32xf32>
    %cst_71 = arith.constant 9.99999997E-7 : f32
    %166 = vector.broadcast %cst_71 : f32 to vector<16x1xf32>
    %167 = arith.addf %163, %166 : vector<16x1xf32>
    %168 = math.rsqrt %167 : vector<16x1xf32>
    %169 = vector.broadcast %168 : vector<16x1xf32> to vector<16x32xf32>
    %170 = arith.mulf %165, %169 : vector<16x32xf32>
    %171 = vector.broadcast %11 : vector<1x32xf32> to vector<16x32xf32>
    %172 = arith.mulf %170, %171 : vector<16x32xf32>
    %173 = vector.broadcast %13 : vector<1x32xf32> to vector<16x32xf32>
    %174 = arith.addf %172, %173 : vector<16x32xf32>
    %cst_72 = arith.constant dense<0.000000e+00> : vector<16x128xf32>
    %175 = tpu.matmul %174, %23, %cst_72 {dimension_numbers = #tpu.dot_dimension_numbers<[1], [1], [0], [0], [0, 0, 1, 0], [], []>} : vector<16x32xf32>, vector<128x32xf32>, vector<16x128xf32> -> vector<16x128xf32>
    %176 = vector.broadcast %25 : vector<1x128xf32> to vector<16x128xf32>
    %177 = arith.addf %175, %176 : vector<16x128xf32>
    %cst_73 = arith.constant 5.000000e-01 : f32
    %178 = vector.broadcast %cst_73 : f32 to vector<16x128xf32>
    %179 = arith.mulf %178, %177 : vector<16x128xf32>
    %cst_74 = arith.constant 0.707106769 : f32
    %180 = vector.broadcast %cst_74 : f32 to vector<16x128xf32>
    %181 = arith.mulf %177, %180 : vector<16x128xf32>
    %cst_75 = arith.constant 0.000000e+00 : f32
    %182 = vector.broadcast %cst_75 : f32 to vector<16x128xf32>
    %183 = arith.cmpf oge, %181, %182 : vector<16x128xf32>
    %cst_76 = arith.constant 1.000000e+00 : f32
    %cst_77 = arith.constant -1.000000e+00 : f32
    %184 = vector.broadcast %cst_76 : f32 to vector<16x128xf32>
    %185 = vector.broadcast %cst_77 : f32 to vector<16x128xf32>
    %186 = arith.select %183, %184, %185 : vector<16x128xi1>, vector<16x128xf32>
    %187 = math.absf %181 : vector<16x128xf32>
    %cst_78 = arith.constant 0.327591091 : f32
    %188 = vector.broadcast %cst_78 : f32 to vector<16x128xf32>
    %189 = arith.mulf %188, %187 : vector<16x128xf32>
    %cst_79 = arith.constant 1.000000e+00 : f32
    %190 = vector.broadcast %cst_79 : f32 to vector<16x128xf32>
    %191 = arith.addf %190, %189 : vector<16x128xf32>
    %cst_80 = arith.constant 1.000000e+00 : f32
    %192 = vector.broadcast %cst_80 : f32 to vector<16x128xf32>
    %193 = arith.divf %192, %191 : vector<16x128xf32>
    %cst_81 = arith.constant 1.06140542 : f32
    %194 = vector.broadcast %cst_81 : f32 to vector<16x128xf32>
    %195 = arith.mulf %194, %193 : vector<16x128xf32>
    %cst_82 = arith.constant -1.45315206 : f32
    %196 = vector.broadcast %cst_82 : f32 to vector<16x128xf32>
    %197 = arith.addf %195, %196 : vector<16x128xf32>
    %198 = arith.mulf %197, %193 : vector<16x128xf32>
    %cst_83 = arith.constant 1.42141378 : f32
    %199 = vector.broadcast %cst_83 : f32 to vector<16x128xf32>
    %200 = arith.addf %198, %199 : vector<16x128xf32>
    %201 = arith.mulf %200, %193 : vector<16x128xf32>
    %cst_84 = arith.constant -0.284496725 : f32
    %202 = vector.broadcast %cst_84 : f32 to vector<16x128xf32>
    %203 = arith.addf %201, %202 : vector<16x128xf32>
    %204 = arith.mulf %203, %193 : vector<16x128xf32>
    %cst_85 = arith.constant 0.254829586 : f32
    %205 = vector.broadcast %cst_85 : f32 to vector<16x128xf32>
    %206 = arith.addf %204, %205 : vector<16x128xf32>
    %207 = arith.mulf %206, %193 : vector<16x128xf32>
    %cst_86 = arith.constant 0.000000e+00 : f32
    %208 = vector.broadcast %cst_86 : f32 to vector<16x128xf32>
    %209 = arith.subf %208, %187 : vector<16x128xf32>
    %210 = arith.mulf %209, %187 : vector<16x128xf32>
    %211 = math.exp %210 : vector<16x128xf32>
    %212 = arith.mulf %207, %211 : vector<16x128xf32>
    %cst_87 = arith.constant 1.000000e+00 : f32
    %213 = vector.broadcast %cst_87 : f32 to vector<16x128xf32>
    %214 = arith.subf %213, %212 : vector<16x128xf32>
    %215 = arith.mulf %186, %214 : vector<16x128xf32>
    %cst_88 = arith.constant 1.000000e+00 : f32
    %216 = vector.broadcast %cst_88 : f32 to vector<16x128xf32>
    %217 = arith.addf %216, %215 : vector<16x128xf32>
    %218 = arith.mulf %179, %217 : vector<16x128xf32>
    %cst_89 = arith.constant dense<0.000000e+00> : vector<16x32xf32>
    %219 = tpu.matmul %218, %27, %cst_89 {dimension_numbers = #tpu.dot_dimension_numbers<[1], [1], [0], [0], [0, 0, 1, 0], [], []>} : vector<16x128xf32>, vector<32x128xf32>, vector<16x32xf32> -> vector<16x32xf32>
    %220 = vector.broadcast %29 : vector<1x32xf32> to vector<16x32xf32>
    %221 = arith.addf %219, %220 : vector<16x32xf32>
    %222 = arith.addf %152, %221 : vector<16x32xf32>
    %c0_90 = arith.constant 0 : index
    %c0_91 = arith.constant 0 : index
    %223 = vector.load %arg20[%c0_90, %c0_91] : memref<16x32xf32, #tpu.memory_space<vmem>>, vector<16x32xf32>
    tpu.vector_store %arg20[%c0_90, %c0_91], %222 {strides = array<i32>} : memref<16x32xf32, #tpu.memory_space<vmem>>, vector<16x32xf32>,
    %c1_i32 = arith.constant 1 : i32
    %224 = arith.cmpi eq, %arg1, %c1_i32 : i32
    %225 = arith.extui %224 : i1 to i32
    %c0_i32_92 = arith.constant 0 : i32
    %226 = arith.cmpi ne, %225, %c0_i32_92 : i32
    scf.if %226 {
      %c0_93 = arith.constant 0 : index
      %c0_94 = arith.constant 0 : index
      %227 = vector.load %arg17[%c0_93, %c0_94] : memref<1x32xf32, #tpu.memory_space<vmem>>, vector<1x32xf32>
      %c0_95 = arith.constant 0 : index
      %c0_96 = arith.constant 0 : index
      %228 = vector.load %arg18[%c0_95, %c0_96] : memref<1x32xf32, #tpu.memory_space<vmem>>, vector<1x32xf32>
      %cst_97 = arith.constant dense<0.000000e+00> : vector<16xf32>
      %229 = vector.multi_reduction <add>, %222, %cst_97 [1] : vector<16x32xf32> to vector<16xf32>
      %230 = vector.shape_cast %229 : vector<16xf32> to vector<16x1xf32>
      %cst_98 = arith.constant 3.200000e+01 : f32
      %231 = vector.broadcast %cst_98 : f32 to vector<16x1xf32>
      %232 = arith.divf %230, %231 : vector<16x1xf32>
      %233 = vector.broadcast %232 : vector<16x1xf32> to vector<16x32xf32>
      %234 = arith.subf %222, %233 : vector<16x32xf32>
      %235 = arith.mulf %234, %234 : vector<16x32xf32>
      %cst_99 = arith.constant dense<0.000000e+00> : vector<16xf32>
      %236 = vector.multi_reduction <add>, %235, %cst_99 [1] : vector<16x32xf32> to vector<16xf32>
      %237 = vector.shape_cast %236 : vector<16xf32> to vector<16x1xf32>
      %cst_100 = arith.constant 3.200000e+01 : f32
      %238 = vector.broadcast %cst_100 : f32 to vector<16x1xf32>
      %239 = arith.divf %237, %238 : vector<16x1xf32>
      %240 = vector.broadcast %232 : vector<16x1xf32> to vector<16x32xf32>
      %241 = arith.subf %222, %240 : vector<16x32xf32>
      %cst_101 = arith.constant 9.99999997E-7 : f32
      %242 = vector.broadcast %cst_101 : f32 to vector<16x1xf32>
      %243 = arith.addf %239, %242 : vector<16x1xf32>
      %244 = math.rsqrt %243 : vector<16x1xf32>
      %245 = vector.broadcast %244 : vector<16x1xf32> to vector<16x32xf32>
      %246 = arith.mulf %241, %245 : vector<16x32xf32>
      %247 = vector.broadcast %227 : vector<1x32xf32> to vector<16x32xf32>
      %248 = arith.mulf %246, %247 : vector<16x32xf32>
      %249 = vector.broadcast %228 : vector<1x32xf32> to vector<16x32xf32>
      %250 = arith.addf %248, %249 : vector<16x32xf32>
      %251 = vector.shape_cast %250 : vector<16x32xf32> to vector<2x8x32xf32>
      %c0_102 = arith.constant 0 : index
      %c0_103 = arith.constant 0 : index
      %c0_104 = arith.constant 0 : index
      %252 = vector.load %arg19[%c0_102, %c0_103, %c0_104] : memref<2x8x32xf32, #tpu.memory_space<vmem>>, vector<2x8x32xf32>
      tpu.vector_store %arg19[%c0_102, %c0_103, %c0_104], %251 {strides = array<i32>} : memref<2x8x32xf32, #tpu.memory_space<vmem>>, vector<2x8x32xf32>,
    } else {
    }
    return
  }
  func.func @transform_0(%arg0: i32, %arg1: i32) -> (i32, i32, i32) {
    %c0_i32 = arith.constant 0 : i32
    %c0_i32_0 = arith.constant 0 : i32
    %c0_i32_1 = arith.constant 0 : i32
    return %arg0, %c0_i32, %c0_i32_0 : i32, i32, i32
  }
  func.func @transform_1(%arg0: i32, %arg1: i32) -> (i32, i32, i32) {
    %c0_i32 = arith.constant 0 : i32
    %c0_i32_0 = arith.constant 0 : i32
    %c0_i32_1 = arith.constant 0 : i32
    return %arg0, %c0_i32, %c0_i32_0 : i32, i32, i32
  }
  func.func @transform_2(%arg0: i32, %arg1: i32) -> (i32, i32, i32, i32) {
    %c0_i32 = arith.constant 0 : i32
    %c0_i32_0 = arith.constant 0 : i32
    %c0_i32_1 = arith.constant 0 : i32
    %c0_i32_2 = arith.constant 0 : i32
    return %arg0, %c0_i32, %c0_i32_0, %c0_i32_1 : i32, i32, i32, i32
  }
  func.func @transform_3(%arg0: i32, %arg1: i32) -> (i32, i32, i32) {
    %c0_i32 = arith.constant 0 : i32
    %c0_i32_0 = arith.constant 0 : i32
    %c0_i32_1 = arith.constant 0 : i32
    return %arg1, %c0_i32, %c0_i32_0 : i32, i32, i32
  }
  func.func @transform_4(%arg0: i32, %arg1: i32) -> (i32, i32, i32) {
    %c0_i32 = arith.constant 0 : i32
    %c0_i32_0 = arith.constant 0 : i32
    %c0_i32_1 = arith.constant 0 : i32
    return %arg1, %c0_i32, %c0_i32_0 : i32, i32, i32
  }
  func.func @transform_5(%arg0: i32, %arg1: i32) -> (i32, i32, i32) {
    %c0_i32 = arith.constant 0 : i32
    %c0_i32_0 = arith.constant 0 : i32
    %c0_i32_1 = arith.constant 0 : i32
    return %arg1, %c0_i32, %c0_i32_0 : i32, i32, i32
  }
  func.func @transform_6(%arg0: i32, %arg1: i32) -> (i32, i32, i32) {
    %c0_i32 = arith.constant 0 : i32
    %c0_i32_0 = arith.constant 0 : i32
    %c0_i32_1 = arith.constant 0 : i32
    return %arg1, %c0_i32, %c0_i32_0 : i32, i32, i32
  }
  func.func @transform_7(%arg0: i32, %arg1: i32) -> (i32, i32, i32) {
    %c0_i32 = arith.constant 0 : i32
    %c0_i32_0 = arith.constant 0 : i32
    %c0_i32_1 = arith.constant 0 : i32
    return %arg1, %c0_i32, %c0_i32_0 : i32, i32, i32
  }
  func.func @transform_8(%arg0: i32, %arg1: i32) -> (i32, i32, i32) {
    %c0_i32 = arith.constant 0 : i32
    %c0_i32_0 = arith.constant 0 : i32
    %c0_i32_1 = arith.constant 0 : i32
    return %arg1, %c0_i32, %c0_i32_0 : i32, i32, i32
  }
  func.func @transform_9(%arg0: i32, %arg1: i32) -> (i32, i32, i32) {
    %c0_i32 = arith.constant 0 : i32
    %c0_i32_0 = arith.constant 0 : i32
    %c0_i32_1 = arith.constant 0 : i32
    return %arg1, %c0_i32, %c0_i32_0 : i32, i32, i32
  }
  func.func @transform_10(%arg0: i32, %arg1: i32) -> (i32, i32, i32) {
    %c0_i32 = arith.constant 0 : i32
    %c0_i32_0 = arith.constant 0 : i32
    %c0_i32_1 = arith.constant 0 : i32
    return %arg1, %c0_i32, %c0_i32_0 : i32, i32, i32
  }
  func.func @transform_11(%arg0: i32, %arg1: i32) -> (i32, i32, i32) {
    %c0_i32 = arith.constant 0 : i32
    %c0_i32_0 = arith.constant 0 : i32
    %c0_i32_1 = arith.constant 0 : i32
    return %arg1, %c0_i32, %c0_i32_0 : i32, i32, i32
  }
  func.func @transform_12(%arg0: i32, %arg1: i32) -> (i32, i32, i32) {
    %c0_i32 = arith.constant 0 : i32
    %c0_i32_0 = arith.constant 0 : i32
    %c0_i32_1 = arith.constant 0 : i32
    return %arg1, %c0_i32, %c0_i32_0 : i32, i32, i32
  }
  func.func @transform_13(%arg0: i32, %arg1: i32) -> (i32, i32, i32) {
    %c0_i32 = arith.constant 0 : i32
    %c0_i32_0 = arith.constant 0 : i32
    %c0_i32_1 = arith.constant 0 : i32
    return %arg1, %c0_i32, %c0_i32_0 : i32, i32, i32
  }
  func.func @transform_14(%arg0: i32, %arg1: i32) -> (i32, i32, i32) {
    %c0_i32 = arith.constant 0 : i32
    %c0_i32_0 = arith.constant 0 : i32
    %c0_i32_1 = arith.constant 0 : i32
    return %arg1, %c0_i32, %c0_i32_0 : i32, i32, i32
  }
  func.func @transform_15(%arg0: i32, %arg1: i32) -> (i32, i32) {
    %c0_i32 = arith.constant 0 : i32
    %c0_i32_0 = arith.constant 0 : i32
    %c0_i32_1 = arith.constant 0 : i32
    return %c0_i32, %c0_i32_0 : i32, i32
  }
  func.func @transform_16(%arg0: i32, %arg1: i32) -> (i32, i32) {
    %c0_i32 = arith.constant 0 : i32
    %c0_i32_0 = arith.constant 0 : i32
    %c0_i32_1 = arith.constant 0 : i32
    return %c0_i32, %c0_i32_0 : i32, i32
  }
  func.func @transform_17(%arg0: i32, %arg1: i32) -> (i32, i32, i32) {
    %c0_i32 = arith.constant 0 : i32
    %c0_i32_0 = arith.constant 0 : i32
    %c0_i32_1 = arith.constant 0 : i32
    return %arg0, %c0_i32, %c0_i32_0 : i32, i32, i32
  }
}

</mosaic_0001>

<bundles_post_ra>
// kernel: tpu_custom_call.1
= control target key start
LH: loop header
LB: loop body
LE: loop exit
PB: predicated region body
PF: predicated region fallthrough
CT: control target
= control target key end

     0   :  { %s4251_s0 = inlined_call_operand.vmem [shape: f32[2,8,32], index: 0, kind: input, shape index: {}]   ;;  %s4252_s1 = inlined_call_operand.vmem [shape: f32[2,8,32], index: 1, kind: input, shape index: {}]   ;;  %s4253_s2 = inlined_call_operand.vmem [shape: f32[2,4,8,8], index: 2, kind: input, shape index: {}]   ;;  %s4254_s3 = inlined_call_operand.vmem [shape: f32[2,1,32], index: 3, kind: input, shape index: {}]   ;;  %s4255_s4 = inlined_call_operand.vmem [shape: f32[2,1,32], index: 4, kind: input, shape index: {}]   ;;  %s4256_s5 = inlined_call_operand.vmem [shape: f32[2,96,32], index: 5, kind: input, shape index: {}]   ;;  %s4257_s6 = inlined_call_operand.vmem [shape: f32[2,1,96], index: 6, kind: input, shape index: {}]   ;;  %s4258_s7 = inlined_call_operand.vmem [shape: f32[2,32,32], index: 7, kind: input, shape index: {}]   ;;  %s4259_s8 = inlined_call_operand.vmem [shape: f32[2,1,32], index: 8, kind: input, shape index: {}]   ;;  %s4260_s9 = inlined_call_operand.vmem [shape: f32[2,1,32], index: 9, kind: input, shape index: {}]   ;;  %s4261_s10 = inlined_call_operand.vmem [shape: f32[2,1,32], index: 10, kind: input, shape index: {}]   ;;  %s4262_s11 = inlined_call_operand.vmem [shape: f32[2,128,32], index: 11, kind: input, shape index: {}]   ;;  %s4263_s12 = inlined_call_operand.vmem [shape: f32[2,1,128], index: 12, kind: input, shape index: {}]   ;;  %s4264_s13 = inlined_call_operand.vmem [shape: f32[2,32,128], index: 13, kind: input, shape index: {}]   ;;  %s4265_s14 = inlined_call_operand.vmem [shape: f32[2,1,32], index: 14, kind: input, shape index: {}]   ;;  %s4266_s15 = inlined_call_operand.vmem [shape: f32[1,32], index: 15, kind: input, shape index: {}]   ;;  %s4267_s16 = inlined_call_operand.vmem [shape: f32[1,32], index: 16, kind: input, shape index: {}]   ;;  %s4268_s17 = inlined_call_operand.hbm [shape: f32[2,8,32], index: 17, kind: output, shape index: {}]  }
   0x1   :  { %4275 = sst [smem:[#allocation9_spill]] %s4251_s0 }
   0x2   :  { %4276 = sst [smem:[#allocation10_spill]] %s4252_s1 }
   0x3   :  { %4277 = sst [smem:[#allocation11_spill]] %s4253_s2 }
   0x4   :  { %4278 = sst [smem:[#allocation12_spill]] %s4256_s5 }
   0x5   :  { %4279 = sst [smem:[#allocation13_spill]] %s4258_s7 }
   0x6   :  { %4280 = sst [smem:[#allocation14_spill]] %s4266_s15 }
   0x7   :  { %4281 = sst [smem:[#allocation15_spill]] %s4267_s16 }
   0x8   :  { %4282 = sst [smem:[#allocation16_spill]] %s4268_s17 }
   0x9   :  { %22 = vsyncpa [#allocation4], 0  ;;  %s3765_s24 = smov 0   ;;  %s3767_s25 = smov 0  }
   0xa   :  { %s3769_s26 = smov 0  }
   0xb LB: > { %4283 = sst [smem:[#allocation6_spill]] %s3650_s25  ;;  %s37_s28 = sadd.s32 1, %s3650_s25  ;;  %s3654_s26 = sphi %s3769_s26, %s28_s26   ;;  %s3650_s25 = sphi %s3767_s25, %s4306_s25   ;;  %s3646_s24 = sphi %s3765_s24, %s4305_s24  }
   0xc   : > { %4284 = sst [smem:[#allocation7_spill]] %s3654_s26  ;;  %p38_p0 = scmp.ge.s32.totalorder %s37_s28, 2 }
   0xd   : > { %p3067_p1 = scmp.ge.s32.totalorder %s3654_s26, 1  ;;  %p628_p2 = scmp.lt.s32.totalorder %s3654_s26, 3 }
   0xe   : > { %s4308_s28 = smov (%p38_p0, %s37_s28), 0 }
   0xf   : > { %4285 = sst [smem:[#allocation8_spill]] %s4308_s28  ;;  %p629_p3 = pnand %p3067_p1, %p628_p2 }
  0x10   : > { %p749_p4 = scmp.lt.s32.totalorder (!%p629_p3), %s3646_s24, 1  ;;  %s4286_s5 = sld [smem:[#allocation12_spill]] (!%p629_p3) }
  0x11   : > { %632 = sbr.rel (%p629_p3) target bundleno = 4041 (0xfc9), region = 88  ;;  %s4287_s7 = sld [smem:[#allocation13_spill]] (!%p629_p3) }
  0x12   : > { %p3075_p5 = scmp.ne.s32.totalorder (!%p629_p3), %s3646_s24, 0 }
  0x18   : > { %s3788_s29 = scalar_select %p749_p4, %s3646_s24, 1 }
  0x19   : > { %797 = sbr.rel (%p3075_p5) target bundleno = 33 (0x21), region = 92  ;;  %s4288_s28 = sld [smem:[#allocation9_spill]] (!%p3075_p5)  ;;  %vm800_vm0 = vcmask (!%p3075_p5), 261120  }
  0x1a   : > { %s3500_s21 = smul.u32 96, %s3788_s29  ;;  %s3153_s30 = sshll.u32 %s3788_s29, 5 }
  0x1b   : > { %s3816_s19 = scalar_lea.vmem %s4287_s7, %s3153_s30  ;;  %s773_s22 = scalar_lea.vmem %s4260_s9, %s3788_s29 }
  0x1c   : > { %s3811_s16 = scalar_lea.vmem %s4286_s5, %s3500_s21  ;;  %s776_s2 = scalar_lea.vmem %s4261_s10, %s3788_s29 }
  0x1d   : > { %s3154_s27 = sshll.u32 %s3788_s29, 7  ;;  %s784_s17 = scalar_lea.vmem %s4263_s12, %s3788_s29 }
  0x1e   : > { %s3834_s5 = scalar_lea.vmem %s4262_s11, %s3154_s27  ;;  %s3839_s7 = scalar_lea.vmem %s4264_s13, %s3153_s30 }
  0x1f   : > { %s792_s0 = scalar_lea.vmem %s4265_s14, %s3788_s29  ;;  %v798_v0 = vld [vmem:[%s4288_s28] sm:$0xff] (!%p3075_p5)  ;;  %v799_v1 = vld [vmem:[%s4288_s28 + $0x8] sm:$0xff] (!%p3075_p5) }
  0x20   : > { %801 = vst.msk [vmem:[#allocation2] sm:$0xff] %vm800_vm0, %v798_v0  ;;  %802 = vst.msk [vmem:[#allocation2 + $0x8] sm:$0xff] %vm800_vm0, %v799_v1 }
  0x21 PF: > { %s4289_s15 = sld [smem:[#allocation10_spill]]  ;;  %vm861_vm1 = vcmask 261120   ;;  %v817_v11 = vld [vmem:[%s3811_s16] sm:$0xff]  ;;  %v818_v12 = vld [vmem:[%s3811_s16 + $0x8] sm:$0xff]  ;;  %v819_v13 = vld [vmem:[%s3811_s16 + $0x10] sm:$0xff]  ;;  %s4292_s23 = scalar_lea.vmem %s4254_s3, %s3788_s29  ;;  %v3656_v55 = vmov 0.0  }
  0x22   : > { %vm3868_vm2 = vmpackc.low %vm861_vm1, %vm861_vm1  ;;  %v3396_v14 = vpack.c.bf16 %v818_v12, %v817_v11  ;;  %v820_v15 = vld [vmem:[%s3811_s16 + $0x18] sm:$0xff]  ;;  %v821_v17 = vld [vmem:[%s3811_s16 + $0x20] sm:$0xff]  ;;  %s4293_s27 = scalar_lea.vmem %s4255_s4, %s3788_s29  ;;  %3279 = vmatprep.subr.mxu1 %v3656_v55  ;;  %vm3657_vm3 = vmmov 0   ;;  %s4294_s18 = scalar_lea.vmem %s4257_s6, %s3788_s29  ;;  %vm1031_vm4 = vcmask 64512   ;;  %vm2376_vm5 = vcmask 195584  }
  0x23   : > { %v3402_v16 = vpack.c.bf16 %v820_v15, %v819_v13  ;;  %v822_v18 = vld [vmem:[%s3811_s16 + $0x28] sm:$0xff]  ;;  %v823_v30 = vld [vmem:[%s3811_s16 + $0x30] sm:$0xff]  ;;  %v824_v31 = vld [vmem:[%s3811_s16 + $0x38] sm:$0xff]  ;;  %3281 = vmatprep.mubr.msk.f32.mxu1 %vm3657_vm3, %v3656_v55  ;;  %s3658_s20 = smov 120   ;;  %s4295_s25 = sld [smem:[#allocation11_spill]]  ;;  %vm2373_vm6 = vcmask 130048  }
  0x24   : > { %3398 = vmatprep.subr.msk.bf16.mxu0 %vm3868_vm2, %v3396_v14  ;;  %v3408_v19 = vpack.c.bf16 %v822_v18, %v821_v17  ;;  %v3414_v32 = vpack.c.bf16 %v824_v31, %v823_v30  ;;  %v825_v33 = vld [vmem:[%s3811_s16 + $0x40] sm:$0xff]  ;;  %v826_v34 = vld [vmem:[%s3811_s16 + $0x48] sm:$0xff]  ;;  %v827_v36 = vld [vmem:[%s3811_s16 + $0x50] sm:$0xff]  ;;  %s3660_s21 = smov 56   ;;  %s3665_s1 = smov 64  }
  0x25   : > { %3401 = vmatpush3.bf16.xpose.msk.msra.mxu0 %vm3868_vm2, %v3396_v14  ;;  %v3420_v35 = vpack.c.bf16 %v826_v34, %v825_v33  ;;  %v828_v37 = vld [vmem:[%s3811_s16 + $0x58] sm:$0xff]  ;;  %v3076_v46 = vld [vmem:[%s4292_s23] ss:$0 sm:$0xff]  ;;  %s3659_s16 = smov 88   ;;  %s3666_s23 = smov 72  }
  0x26   : > { %3404 = vmatprep.subr.msk.bf16.mxu0 %vm3868_vm2, %v3402_v16  ;;  %v3426_v38 = vpack.c.bf16 %v828_v37, %v827_v36  ;;  %v3077_v48 = vld [vmem:[%s4293_s27] ss:$0 sm:$0xff]  ;;  %s4297_s26 = scalar_lea.vmem %s4259_s8, %s3788_s29  ;;  %p3146_p6 = scmp.ne.s32.totalorder %s3646_s24, 1 }
  0x27   : > { %v803_v2 = vld [vmem:[%s4289_s15] sm:$0xff]  ;;  %v804_v4 = vld [vmem:[%s4289_s15 + $0x8] sm:$0xff] }
  0x28   : > { %v857_v3 = vld [vmem:[#allocation2] sm:$0xff]  ;;  %v858_v6 = vld [vmem:[#allocation2 + $0x8] sm:$0xff] }
  0x29   : > { %v3858_v5 = vadd.f32 %v857_v3, %v803_v2  ;;  %v3860_v7 = vadd.f32 %v858_v6, %v804_v4  ;;  %v3078_v56 = vld [vmem:[%s4294_s18] ss:$0 sm:$0xff]  ;;  %s4296_s27 = smov %s4295_s25  ;;  %v806_v1 = vld [vmem:[%s4295_s25 + $0x8] sm:$0xff]  ;;  %s3661_s18 = smov 96  }
  0x2a   : > { %v805_v36 = vld [vmem:[%s4296_s27] sm:$0xff]  ;;  %s3667_s25 = smov 104  }
  0x2b   : > { %v862_v8 = vsel %vm861_vm1, %v3858_v5, 0.0  ;;  %v865_v9 = vsel %vm861_vm1, %v3860_v7, 0.0  ;;  %v3125_v10 = vld [vmem:[%s776_s2] ss:$0 sm:$0xff] }
  0x2c   : > { %863 = vadd.xlane.f32.xlu0 %v862_v8  ;;  %v810_v8 = vld [vmem:[%s4296_s27 + $0x28] sm:$0xff] }
  0x2d   : > { %3407 = vmatpush3.bf16.xpose.msk.msra.mxu0 %vm3868_vm2, %v3402_v16 }
  0x2e   : > { %3410 = vmatprep.subr.msk.bf16.mxu0 %vm3868_vm2, %v3408_v19 }
  0x30   : > { %866 = vadd.xlane.f32.xlu0 %v865_v9 }
  0x35   : > { %3413 = vmatpush3.bf16.xpose.msk.msra.mxu0 %vm3868_vm2, %v3408_v19 }
  0x36   : > { %3416 = vmatprep.subr.msk.bf16.mxu0 %vm3868_vm2, %v3414_v32 }
  0x3d   : > { %3419 = vmatpush3.bf16.xpose.msk.msra.mxu0 %vm3868_vm2, %v3414_v32 }
  0x3e   : > { %3422 = vmatprep.subr.msk.bf16.mxu0 %vm3868_vm2, %v3420_v35 }
  0x45   : > { %3425 = vmatpush3.bf16.xpose.msk.msra.mxu0 %vm3868_vm2, %v3420_v35 }
  0x46   : > { %3428 = vmatprep.subr.msk.bf16.mxu0 %vm3868_vm2, %v3426_v38 }
  0x4d   : > { %3431 = vmatpush3.bf16.xpose.msk.msra.mxu0 %vm3868_vm2, %v3426_v38 }
  0x4e   : > { %3259 = vmatprep.subr.mxu0 %v3656_v55 }
  0xb9   : > { %v864_v20 = vpop.xlane.xlu0 %863 }
  0xba   : > { %v869_v21 = vmul.f32 0.03125, %v864_v20 }
  0xbc   : > { %v871_v22 = vsub.f32 %v3858_v5, %v869_v21 }
  0xbd   : > { %v867_v23 = vpop.xlane.xlu0 %866 }
  0xbe   : > { %v870_v24 = vmul.f32 0.03125, %v867_v23  ;;  %v873_v25 = vmul.f32 %v871_v22, %v871_v22 }
  0xc0   : > { %v872_v26 = vsub.f32 %v3860_v7, %v870_v24  ;;  %v875_v27 = vsel %vm861_vm1, %v873_v25, 0.0 }
  0xc1   : > { %876 = vadd.xlane.f32.xlu1 %v875_v27 }
  0xc2   : > { %v874_v28 = vmul.f32 %v872_v26, %v872_v26 }
  0xc4   : > { %v878_v29 = vsel %vm861_vm1, %v874_v28, 0.0 }
  0xc5   : > { %879 = vadd.xlane.f32.xlu1 %v878_v29 }
 0x14e   : > { %v877_v39 = vpop.xlane.xlu1 %876 }
 0x14f   : > { %v881_v40 = vmul.f32 0.03125, %v877_v39 }
 0x151   : > { %v883_v41 = vadd.f32 1e-06, %v881_v40 }
 0x152   : > { %v880_v42 = vpop.xlane.xlu1 %879 }
 0x153   : > { %3550 = vrsqrt.f32 %v883_v41  ;;  %v882_v43 = vmul.f32 0.03125, %v880_v42 }
 0x155   : > { %v884_v44 = vadd.f32 1e-06, %v882_v43  ;;  %v809_v43 = vld [vmem:[%s4296_s27 + $0x20] sm:$0xff] }
 0x157   : > { %3552 = vrsqrt.f32 %v884_v44 }
 0x15d   : > { %v3551_v45 = vpop.eup %3550 }
 0x15e   : > { %v887_v47 = vmul.f32 %v3551_v45, %v871_v22 }
 0x160   : > { %v895_v49 = vmul.f32 %v3076_v46, %v887_v47 }
 0x161   : > { %v3553_v50 = vpop.eup %3552 }
 0x162   : > { %v888_v51 = vmul.f32 %v3553_v50, %v872_v26  ;;  %v903_v52 = vadd.f32 %v3077_v48, %v895_v49 }
 0x164   : > { %v896_v53 = vmul.f32 %v3076_v46, %v888_v51  ;;  %3256 = vmatprep.mubr.msk.f32.mxu0 %vm861_vm1, %v903_v52 }
 0x166   : > { %v904_v54 = vadd.f32 %v3077_v48, %v896_v53 }
 0x168   : > { %3257 = vmatmul.mubr.msk.f32.vlgmr.msra.gmra.mrb[0].mxu0 %vm861_vm1, %v904_v54 }
 0x169   : > { %3261 = vmatprep.mubr.msk.f32.mxu0 %vm3657_vm3, %v3656_v55 }
 0x23b   : > { %v3258_v57 = vpop.f32.mrb[0].mxu0 }
 0x23c   : > { %v1019_v58 = vpop.f32.mrb[1].mxu0  ;;  %v3939_v60 = vadd.f32 %v3258_v57, %v3078_v56 }
 0x23d   : > { %v3935_v59 = vadd.f32 %v3078_v56, %v1019_v58 }
 0x23f   : > { %1357 = vrot.lane.b32.xlu1 %v3935_v59, %s3658_s20  ;;  %1359 = vrot.lane.b32.xlu0 %v3935_v59, %s3659_s16 }
 0x243   : > { %1437 = vrot.lane.b32.xlu1 %v3939_v60, %s3659_s16  ;;  %s3663_s16 = smov 112  }
 0x247   : > { %1435 = vrot.lane.b32.xlu1 %v3939_v60, %s3658_s20  ;;  %s3662_s20 = smov 80  }
 0x2b1   : > { %v1358_v61 = vpop.permute.xlu1 %1357  ;;  %v1360_v62 = vpop.permute.xlu0 %1359 }
 0x2b2   : > { %3280 = vmatpush3.xpose.msk.msra.mxu1 %vm1031_vm4, %v1360_v62 }
 0x2b3   : > { %3284 = vmatprep.subr.mxu1 %v3656_v55 }
 0x2b5   : > { %v1438_v63 = vpop.permute.xlu1 %1437  ;;  %3282 = vmatmul.mubr.msk.f32.vlgmr.msra.gmra.mrb[0].mxu1 %vm1031_vm4, %v1358_v61  ;;  %v807_v61 = vld [vmem:[%s4296_s27 + $0x10] sm:$0xff] }
 0x2b6   : > { %3285 = vmatpush3.xpose.msk.msra.mxu1 %vm1031_vm4, %v1438_v63  ;;  %3286 = vmatprep.mubr.msk.f32.mxu1 %vm3657_vm3, %v3656_v55 }
 0x2b7   : > { %3289 = vmatprep.subr.mxu1 %v3656_v55 }
 0x2b9   : > { %v1436_v0 = vpop.permute.xlu1 %1435 }
 0x2ba   : > { %3287 = vmatmul.mubr.msk.f32.vlgmr.msra.gmra.mrb[2].mxu1 %vm1031_vm4, %v1436_v0 }
 0x2bb   : > { %3291 = vmatprep.mubr.msk.f32.mxu1 %vm3657_vm3, %v3656_v55 }
 0x388   : > { %v1431_v2 = vpop.f32.mrb[0].mxu1 }
 0x389   : > { %v1432_v3 = vadd.f32 %v1431_v2, %v806_v1  ;;  %v3283_v4 = vpop.f32.mrb[1].mxu1  ;;  %v811_v1 = vld [vmem:[%s4296_s27 + $0x30] sm:$0xff] }
 0x38b   : > { %v1513_v6 = vsel %vm1031_vm4, %v1432_v3, -inf }
 0x38c   : > { %1514 = vmax.xlane.f32.xlu0 %v1513_v6 }
 0x38d   : > { %v1509_v9 = vpop.f32.mrb[2].mxu1 }
 0x38e   : > { %v1510_v11 = vadd.f32 %v1509_v9, %v810_v8  ;;  %v3288_v12 = vpop.f32.mrb[3].mxu1 }
 0x390   : > { %v1516_v13 = vsel %vm1031_vm4, %v1510_v11, -inf }
 0x391   : > { %1517 = vmax.xlane.f32.xlu1 %v1516_v13 }
 0x3a2   : > { %1611 = vrot.lane.b32.xlu1 %v3939_v60, %s3660_s21 }
 0x3a6   : > { %1029 = vrot.lane.b32.xlu1 %v3935_v59, %s3661_s18 }
 0x3aa   : > { %1689 = vrot.lane.b32.xlu1 %v3935_v59, %s3662_s20 }
 0x3ae   : > { %1107 = vrot.lane.b32.xlu1 %v3939_v60, %s3661_s18 }
 0x3b2   : > { %1765 = vrot.lane.b32.xlu1 %v3939_v60, %s3663_s16 }
 0x419   : > { %v1515_v14 = vpop.xlane.xlu0 %1514 }
 0x41a   : > { %v1519_v15 = vsub.f32 %v1432_v3, %v1515_v14 }
 0x41c   : > { %v1521_v16 = vmul.f32 1.442695, %v1519_v15 }
 0x41e   : > { %3554 = vpow2.f32 %v1521_v16  ;;  %v1518_v17 = vpop.xlane.xlu1 %1517 }
 0x41f   : > { %v1520_v24 = vsub.f32 %v1510_v11, %v1518_v17 }
 0x421   : > { %v1523_v25 = vmul.f32 1.442695, %v1520_v24 }
 0x422   : > { %v1612_v18 = vpop.permute.xlu1 %1611 }
 0x423   : > { %3556 = vpow2.f32 %v1523_v25 }
 0x426   : > { %v1030_v19 = vpop.permute.xlu1 %1029 }
 0x427   : > { %3260 = vmatpush3.xpose.msk.msra.mxu0 %vm1031_vm4, %v1030_v19 }
 0x428   : > { %v3555_v20 = vpop.eup %3554  ;;  %3264 = vmatprep.subr.mxu0 %v3656_v55 }
 0x429   : > { %v1525_v21 = vsel %vm1031_vm4, %v3555_v20, 0.0 }
 0x42a   : > { %1526 = vadd.xlane.f32.xlu0 %v1525_v21  ;;  %3262 = vmatmul.mubr.msk.f32.vlgmr.msra.gmra.mrb[2].mxu0 %vm1031_vm4, %v3935_v59  ;;  %v1690_v22 = vpop.permute.xlu1 %1689 }
 0x42b   : > { %3266 = vmatprep.mubr.msk.f32.mxu0 %vm3657_vm3, %v3656_v55 }
 0x42d   : > { %v3557_v26 = vpop.eup %3556 }
 0x42e   : > { %v1108_v23 = vpop.permute.xlu1 %1107  ;;  %v1528_v27 = vsel %vm1031_vm4, %v3557_v26, 0.0 }
 0x42f   : > { %3265 = vmatpush3.xpose.msk.msra.mxu0 %vm1031_vm4, %v1108_v23 }
 0x430   : > { %3269 = vmatprep.subr.mxu0 %v3656_v55 }
 0x432   : > { %3267 = vmatmul.mubr.msk.f32.vlgmr.msra.gmra.mrb[4].mxu0 %vm1031_vm4, %v3939_v60  ;;  %v1766_v42 = vpop.permute.xlu1 %1765 }
 0x433   : > { %3271 = vmatprep.mubr.msk.f32.mxu0 %vm3657_vm3, %v3656_v55 }
 0x440   : > { %1535 = vrot.lane.b32.xlu0 %v3935_v59, %s3660_s21 }
 0x45f   : > { %1529 = vadd.xlane.f32.xlu0 %v1528_v27 }
 0x475   : > { %1687 = vrot.lane.b32.xlu0 %v3935_v59, %s3663_s16  ;;  %s3664_s16 = smov 48  }
 0x479   : > { %1767 = vrot.lane.b32.xlu0 %v3939_v60, %s3662_s20  ;;  %s3668_s20 = smov 40  }
 0x4b7   : > { %v1527_v28 = vpop.xlane.xlu0 %1526 }
 0x4b8   : > { %3558 = vrcp.f32 %v1527_v28 }
 0x4bb   : > { %v1536_v29 = vpop.permute.xlu0 %1535 }
 0x4bc   : > { %3290 = vmatpush3.msra.mxu1 %v1536_v29 }
 0x4bd   : > { %3294 = vmatprep.subr.mxu1 %v3656_v55 }
 0x4c2   : > { %v3559_v30 = vpop.eup %3558 }
 0x4c3   : > { %v1533_v31 = vmul.f32 %v3559_v30, %v3555_v20 }
 0x4c5   : > { %3292 = vmatmul.mubr.msk.f32.vlgmr.msra.gmra.mrb[4].mxu1 %vm1031_vm4, %v1533_v31 }
 0x4c6   : > { %3295 = vmatpush3.msra.mxu1 %v1612_v18  ;;  %3296 = vmatprep.mubr.msk.f32.mxu1 %vm3657_vm3, %v3656_v55 }
 0x4c7   : > { %3299 = vmatprep.subr.mxu1 %v3656_v55 }
 0x4ec   : > { %v1530_v32 = vpop.xlane.xlu0 %1529 }
 0x4ed   : > { %3560 = vrcp.f32 %v1530_v32 }
 0x4f0   : > { %v1688_v35 = vpop.permute.xlu0 %1687 }
 0x4f4   : > { %v1768_v38 = vpop.permute.xlu0 %1767 }
 0x4f7   : > { %v3561_v33 = vpop.eup %3560 }
 0x4f8   : > { %v1534_v34 = vmul.f32 %v3561_v33, %v3557_v26 }
 0x4fa   : > { %3297 = vmatmul.mubr.msk.f32.vlgmr.msra.gmra.mrb[6].mxu1 %vm1031_vm4, %v1534_v34 }
 0x4fb   : > { %3300 = vmatpush3.xpose.msk.msra.mxu1 %vm1031_vm4, %v1690_v22  ;;  %3301 = vmatprep.mubr.msk.f32.mxu1 %vm3657_vm3, %v3656_v55 }
 0x4fc   : > { %3304 = vmatprep.subr.mxu1 %v3656_v55 }
 0x4fd   : > { %v1102_v37 = vpop.f32.mrb[2].mxu0 }
 0x4fe   : > { %v1103_v39 = vadd.f32 %v1102_v37, %v805_v36  ;;  %v3263_v40 = vpop.f32.mrb[3].mxu0  ;;  %3302 = vmatmul.mubr.msk.f32.vlgmr.msra.gmra.mrb[8].mxu1 %vm1031_vm4, %v1688_v35 }
 0x4ff   : > { %3305 = vmatpush3.xpose.msk.msra.mxu1 %vm1031_vm4, %v1768_v38  ;;  %3306 = vmatprep.mubr.msk.f32.mxu1 %vm3657_vm3, %v3656_v55 }
 0x500   : > { %v1183_v41 = vsel %vm1031_vm4, %v1103_v39, -inf  ;;  %3309 = vmatprep.subr.mxu1 %v3656_v55 }
 0x501   : > { %1184 = vmax.xlane.f32.xlu0 %v1183_v41 }
 0x502   : > { %3307 = vmatmul.mubr.msk.f32.vlgmr.msra.gmra.mrb[10].mxu1 %vm1031_vm4, %v1766_v42 }
 0x503   : > { %3311 = vmatprep.mubr.msk.f32.mxu1 %vm3657_vm3, %v3656_v55 }
 0x505   : > { %v1179_v44 = vpop.f32.mrb[4].mxu0 }
 0x506   : > { %v1180_v45 = vadd.f32 %v1179_v44, %v809_v43  ;;  %v3268_v46 = vpop.f32.mrb[5].mxu0 }
 0x508   : > { %v1186_v47 = vsel %vm1031_vm4, %v1180_v45, -inf }
 0x509   : > { %1187 = vmax.xlane.f32.xlu0 %v1186_v47 }
 0x58e   : > { %v1185_v50 = vpop.xlane.xlu0 %1184 }
 0x58f   : > { %v1189_v51 = vsub.f32 %v1103_v39, %v1185_v50 }
 0x591   : > { %v1191_v53 = vmul.f32 1.442695, %v1189_v51 }
 0x593   : > { %3562 = vpow2.f32 %v1191_v53 }
 0x596   : > { %v1188_v52 = vpop.xlane.xlu0 %1187 }
 0x597   : > { %v1190_v54 = vsub.f32 %v1180_v45, %v1188_v52 }
 0x598   : > { %v4011_v48 = vpop.f32.mrb[4].mxu1 }
 0x599   : > { %v3293_v49 = vpop.f32.mrb[5].mxu1  ;;  %v1193_v58 = vmul.f32 1.442695, %v1190_v54 }
 0x59a   : > { %v808_v49 = vld [vmem:[%s4296_s27 + $0x18] sm:$0xff] }
 0x59b   : > { %3564 = vpow2.f32 %v1193_v58 }
 0x59d   : > { %v3563_v9 = vpop.eup %3562 }
 0x59e   : > { %v1195_v11 = vsel %vm1031_vm4, %v3563_v9, 0.0 }
 0x5a5   : > { %v3565_v12 = vpop.eup %3564 }
 0x5a6   : > { %v1198_v13 = vsel %vm1031_vm4, %v3565_v12, 0.0 }
 0x5cd   : > { %v4013_v56 = vpop.f32.mrb[6].mxu1 }
 0x5ce   : > { %v3298_v57 = vpop.f32.mrb[7].mxu1 }
 0x5d1   : > { %v1761_v62 = vpop.f32.mrb[8].mxu1 }
 0x5d2   : > { %v1762_v63 = vadd.f32 %v1761_v62, %v807_v61  ;;  %v3303_v0 = vpop.f32.mrb[9].mxu1 }
 0x5d4   : > { %v1843_v2 = vsel %vm1031_vm4, %v1762_v63, -inf }
 0x5d5   : > { %1844 = vmax.xlane.f32.xlu1 %v1843_v2  ;;  %v1839_v3 = vpop.f32.mrb[10].mxu1 }
 0x5d6   : > { %v1840_v4 = vadd.f32 %v1839_v3, %v811_v1  ;;  %v3308_v6 = vpop.f32.mrb[11].mxu1 }
 0x5d8   : > { %v1846_v8 = vsel %vm1031_vm4, %v1840_v4, -inf }
 0x5d9   : > { %1847 = vmax.xlane.f32.xlu0 %v1846_v8 }
 0x5dd   : > { %1196 = vadd.xlane.f32.xlu0 %v1195_v11 }
 0x5e1   : > { %1199 = vadd.xlane.f32.xlu0 %v1198_v13 }
 0x5e6   : > { %1865 = vrot.lane.b32.xlu1 %v3935_v59, %s3664_s16 }
 0x5ea   : > { %1281 = vrot.lane.b32.xlu1 %v3939_v60, %s3665_s1 }
 0x5ee   : > { %1941 = vrot.lane.b32.xlu1 %v3939_v60, %s3664_s16  ;;  %s3669_s16 = smov 8  }
 0x5f2   : > { %2097 = vrot.lane.b32.xlu1 %v3939_v60, %s3666_s23 }
 0x5f7   : > { %1205 = vrot.lane.b32.xlu0 %v3935_v59, %s3665_s1  ;;  %s3670_s1 = smov 16  }
 0x5fb   : > { %2019 = vrot.lane.b32.xlu0 %v3935_v59, %s3666_s23  ;;  %s3671_s23 = smov 24  }
 0x5ff   : > { %2017 = vrot.lane.b32.xlu0 %v3935_v59, %s3667_s25 }
 0x662   : > { %v1845_v14 = vpop.xlane.xlu1 %1844 }
 0x663   : > { %v1849_v15 = vsub.f32 %v1762_v63, %v1845_v14  ;;  %v812_v63 = vld [vmem:[%s4296_s27 + $0x38] sm:$0xff] }
 0x665   : > { %v1851_v16 = vmul.f32 1.442695, %v1849_v15 }
 0x666   : > { %v1866_v17 = vpop.permute.xlu1 %1865  ;;  %v1848_v18 = vpop.xlane.xlu0 %1847 }
 0x667   : > { %3566 = vpow2.f32 %v1851_v16  ;;  %v1850_v19 = vsub.f32 %v1840_v4, %v1848_v18  ;;  %3310 = vmatpush3.msra.mxu1 %v1866_v17 }
 0x668   : > { %3314 = vmatprep.subr.mxu1 %v3656_v55 }
 0x669   : > { %v1853_v20 = vmul.f32 1.442695, %v1850_v19 }
 0x66a   : > { %v1197_v21 = vpop.xlane.xlu0 %1196  ;;  %v1282_v31 = vpop.permute.xlu1 %1281 }
 0x66b   : > { %3568 = vpow2.f32 %v1853_v20  ;;  %v830_v20 = vld [vmem:[%s3816_s19] sm:$0xff] }
 0x66c   : > { %3570 = vrcp.f32 %v1197_v21  ;;  %v831_v21 = vld [vmem:[%s3816_s19 + $0x8] sm:$0xff] }
 0x66e   : > { %v1200_v22 = vpop.xlane.xlu0 %1199  ;;  %v1942_v35 = vpop.permute.xlu1 %1941 }
 0x66f   : > { %3572 = vrcp.f32 %v1200_v22  ;;  %v832_v22 = vld [vmem:[%s3816_s19 + $0x10] sm:$0xff] }
 0x671   : > { %v3567_v23 = vpop.eup %3566 }
 0x672   : > { %v1206_v24 = vpop.permute.xlu0 %1205  ;;  %v1855_v25 = vsel %vm1031_vm4, %v3567_v23, 0.0  ;;  %v2098_v36 = vpop.permute.xlu1 %2097 }
 0x673   : > { %1856 = vadd.xlane.f32.xlu1 %v1855_v25  ;;  %3270 = vmatpush3.msra.mxu0 %v1206_v24 }
 0x674   : > { %3274 = vmatprep.subr.mxu0 %v3656_v55 }
 0x675   : > { %v3569_v26 = vpop.eup %3568 }
 0x676   : > { %v3571_v27 = vpop.eup %3570  ;;  %v1858_v28 = vsel %vm1031_vm4, %v3569_v26, 0.0  ;;  %v2020_v33 = vpop.permute.xlu0 %2019 }
 0x677   : > { %v1203_v29 = vmul.f32 %v3571_v27, %v3563_v9  ;;  %1859 = vadd.xlane.f32.xlu1 %v1858_v28 }
 0x679   : > { %v3573_v30 = vpop.eup %3572  ;;  %3272 = vmatmul.mubr.msk.f32.vlgmr.msra.gmra.mrb[6].mxu0 %vm1031_vm4, %v1203_v29 }
 0x67a   : > { %v1204_v32 = vmul.f32 %v3573_v30, %v3565_v12  ;;  %3275 = vmatpush3.msra.mxu0 %v1282_v31  ;;  %3276 = vmatprep.mubr.msk.f32.mxu0 %vm3657_vm3, %v3656_v55  ;;  %v2018_v34 = vpop.permute.xlu0 %2017 }
 0x67b   : > { %3319 = vmatprep.subr.mxu0 %v3656_v55 }
 0x67d   : > { %3277 = vmatmul.mubr.msk.f32.vlgmr.msra.gmra.mrb[8].mxu0 %vm1031_vm4, %v1204_v32 }
 0x67e   : > { %3321 = vmatprep.mubr.msk.f32.mxu0 %vm3657_vm3, %v3656_v55 }
 0x681   : > { %3320 = vmatpush3.xpose.msk.msra.mxu0 %vm1031_vm4, %v2020_v33 }
 0x682   : > { %3329 = vmatprep.subr.mxu0 %v3656_v55 }
 0x684   : > { %3322 = vmatmul.mubr.msk.f32.vlgmr.msra.gmra.mrb[10].mxu0 %vm1031_vm4, %v2018_v34 }
 0x685   : > { %3331 = vmatprep.mubr.msk.f32.mxu0 %vm3657_vm3, %v3656_v55 }
 0x688   : > { %2095 = vrot.lane.b32.xlu1 %v3939_v60, %s3667_s25 }
 0x700   : > { %v1857_v37 = vpop.xlane.xlu1 %1856 }
 0x701   : > { %3574 = vrcp.f32 %v1857_v37 }
 0x704   : > { %v1860_v38 = vpop.xlane.xlu1 %1859 }
 0x705   : > { %3576 = vrcp.f32 %v1860_v38 }
 0x708   : > { %v2096_v43 = vpop.permute.xlu1 %2095 }
 0x70b   : > { %v3575_v39 = vpop.eup %3574 }
 0x70c   : > { %v1863_v40 = vmul.f32 %v3575_v39, %v3567_v23  ;;  %v833_v23 = vld [vmem:[%s3816_s19 + $0x18] sm:$0xff] }
 0x70d   : > { %v3438_v24 = vpack.c.bf16 %v833_v23, %v832_v22 }
 0x70e   : > { %3312 = vmatmul.mubr.msk.f32.vlgmr.msra.gmra.mrb[12].mxu1 %vm1031_vm4, %v1863_v40 }
 0x70f   : > { %v3577_v41 = vpop.eup %3576  ;;  %3315 = vmatpush3.msra.mxu1 %v1942_v35  ;;  %3316 = vmatprep.mubr.msk.f32.mxu1 %vm3657_vm3, %v3656_v55 }
 0x710   : > { %v1864_v42 = vmul.f32 %v3577_v41, %v3569_v26  ;;  %3324 = vmatprep.subr.mxu1 %v3656_v55  ;;  %v3117_v41 = vld [vmem:[%s4297_s26] ss:$0 sm:$0xff] }
 0x712   : > { %3317 = vmatmul.mubr.msk.f32.vlgmr.msra.gmra.mrb[14].mxu1 %vm1031_vm4, %v1864_v42 }
 0x713   : > { %3326 = vmatprep.mubr.msk.f32.mxu1 %vm3657_vm3, %v3656_v55 }
 0x716   : > { %3325 = vmatpush3.xpose.msk.msra.mxu1 %vm1031_vm4, %v2098_v36 }
 0x717   : > { %3334 = vmatprep.subr.mxu1 %v3656_v55 }
 0x719   : > { %3327 = vmatmul.mubr.msk.f32.vlgmr.msra.gmra.mrb[16].mxu1 %vm1031_vm4, %v2096_v43 }
 0x71a   : > { %3336 = vmatprep.mubr.msk.f32.mxu1 %vm3657_vm3, %v3656_v55 }
 0x74c   : > { %v4063_v44 = vpop.f32.mrb[6].mxu0 }
 0x74d   : > { %v3273_v45 = vpop.f32.mrb[7].mxu0 }
 0x750   : > { %v4065_v46 = vpop.f32.mrb[8].mxu0 }
 0x751   : > { %v3278_v47 = vpop.f32.mrb[9].mxu0 }
 0x757   : > { %v2091_v50 = vpop.f32.mrb[10].mxu0 }
 0x758   : > { %v2092_v51 = vadd.f32 %v2091_v50, %v808_v49  ;;  %v3323_v52 = vpop.f32.mrb[11].mxu0 }
 0x759   : > { %v836_v52 = vld [vmem:[%s3834_s5 + $0x8] sm:$0xff] }
 0x75a   : > { %v2173_v53 = vsel %vm1031_vm4, %v2092_v51, -inf }
 0x75b   : > { %2174 = vmax.xlane.f32.xlu0 %v2173_v53  ;;  %v837_v53 = vld [vmem:[%s3834_s5 + $0x10] sm:$0xff] }
 0x7e1   : > { %v1937_v54 = vpop.f32.mrb[12].mxu1 }
 0x7e2   : > { %v3313_v57 = vpop.f32.mrb[13].mxu1 }
 0x7e5   : > { %v2013_v58 = vpop.f32.mrb[14].mxu1 }
 0x7e6   : > { %v3318_v55 = vpop.f32.mrb[15].mxu1 }
 0x7e8   : > { %v2175_v61 = vpop.xlane.xlu0 %2174 }
 0x7e9   : > { %v2179_v62 = vsub.f32 %v2092_v51, %v2175_v61  ;;  %v835_v51 = vld [vmem:[%s3834_s5] sm:$0xff]  ;;  %v841_v61 = vld [vmem:[%s3834_s5 + $0x30] sm:$0xff] }
 0x7eb   : > { %v2181_v0 = vmul.f32 1.442695, %v2179_v62  ;;  %v842_v62 = vld [vmem:[%s3834_s5 + $0x38] sm:$0xff] }
 0x7ec   : > { %v2169_v1 = vpop.f32.mrb[16].mxu1 }
 0x7ed   : > { %3578 = vpow2.f32 %v2181_v0  ;;  %v2170_v2 = vadd.f32 %v2169_v1, %v812_v63  ;;  %v3328_v3 = vpop.f32.mrb[17].mxu1  ;;  %v3462_v63 = vpack.c.bf16 %v842_v62, %v841_v61  ;;  %v843_v0 = vld [vmem:[%s3834_s5 + $0x40] sm:$0xff]  ;;  %v844_v1 = vld [vmem:[%s3834_s5 + $0x48] sm:$0xff] }
 0x7ef   : > { %v2176_v4 = vsel %vm1031_vm4, %v2170_v2, -inf }
 0x7f0   : > { %2177 = vmax.xlane.f32.xlu1 %v2176_v4 }
 0x7f7   : > { %v3579_v6 = vpop.eup %3578 }
 0x7f8   : > { %v2185_v8 = vsel %vm1031_vm4, %v3579_v6, 0.0 }
 0x7f9   : > { %2186 = vadd.xlane.f32.xlu0 %v2185_v8 }
 0x801   : > { %2271 = vrot.lane.b32.xlu1 %v3939_v60, %s3668_s20 }
 0x805   : > { %2349 = vrot.lane.b32.xlu1 %v4011_v48, %s3669_s16 }
 0x809   : > { %2351 = vrot.lane.b32.xlu1 %v4013_v56, %s3669_s16 }
 0x80d   : > { %2359 = vrot.lane.b32.xlu1 %v2013_v58, %s3670_s1  ;;  %v840_v58 = vld [vmem:[%s3834_s5 + $0x28] sm:$0xff] }
 0x87d   : > { %v2178_v9 = vpop.xlane.xlu1 %2177 }
 0x87e   : > { %v2180_v11 = vsub.f32 %v2170_v2, %v2178_v9  ;;  %v3468_v2 = vpack.c.bf16 %v844_v1, %v843_v0 }
 0x880   : > { %v2183_v12 = vmul.f32 1.442695, %v2180_v11 }
 0x881   : > { %v2272_v13 = vpop.permute.xlu1 %2271 }
 0x882   : > { %3580 = vpow2.f32 %v2183_v12  ;;  %3335 = vmatpush3.msra.mxu1 %v2272_v13 }
 0x885   : > { %v2350_v29 = vpop.permute.xlu1 %2349 }
 0x886   : > { %v2187_v60 = vpop.xlane.xlu0 %2186  ;;  %v2371_v32 = vsel %vm1031_vm4, %v4063_v44, %v2350_v29 }
 0x887   : > { %3582 = vrcp.f32 %v2187_v60  ;;  %v845_v60 = vld [vmem:[%s3834_s5 + $0x50] sm:$0xff] }
 0x889   : > { %v2352_v31 = vpop.permute.xlu1 %2351 }
 0x88a   : > { %v2372_v37 = vsel %vm1031_vm4, %v4065_v46, %v2352_v31 }
 0x88c   : > { %v3581_v14 = vpop.eup %3580 }
 0x88d   : > { %v2188_v15 = vsel %vm1031_vm4, %v3581_v14, 0.0  ;;  %v2360_v36 = vpop.permute.xlu1 %2359 }
 0x88e   : > { %2189 = vadd.xlane.f32.xlu0 %v2188_v15  ;;  %v2375_v38 = vsel %vm2373_vm6, %v2372_v37, %v2360_v36  ;;  %v852_v36 = vld [vmem:[%s3839_s7] sm:$0xff]  ;;  %v853_v37 = vld [vmem:[%s3839_s7 + $0x8] sm:$0xff] }
 0x891   : > { %v3583_v56 = vpop.eup %3582 }
 0x892   : > { %v2193_v16 = vmul.f32 %v3583_v56, %v3579_v6 }
 0x8a4   : > { %2195 = vrot.lane.b32.xlu0 %v3935_v59, %s3668_s20  ;;  %v3432_v59 = vpack.c.bf16 %v831_v21, %v830_v20  ;;  %v850_v20 = vld [vmem:[%s3834_s5 + $0x78] sm:$0xff] }
 0x8a8   : > { %2357 = vrot.lane.b32.xlu0 %v1937_v54, %s3670_s1  ;;  %v3444_v54 = vpack.c.bf16 %v836_v52, %v835_v51 }
 0x8aa   : > { %3446 = vmatprep.subr.msk.bf16.mxu1 %vm3868_vm2, %v3444_v54 }
 0x91b   : > { %v2190_v48 = vpop.xlane.xlu0 %2189 }
 0x91c   : > { %3584 = vrcp.f32 %v2190_v48  ;;  %v846_v48 = vld [vmem:[%s3834_s5 + $0x58] sm:$0xff] }
 0x91d   : > { %v3474_v56 = vpack.c.bf16 %v846_v48, %v845_v60 }
 0x91f   : > { %v2196_v17 = vpop.permute.xlu0 %2195 }
 0x920   : > { %3330 = vmatpush3.msra.mxu0 %v2196_v17  ;;  %v848_v17 = vld [vmem:[%s3834_s5 + $0x68] sm:$0xff] }
 0x921   : > { %3332 = vmatmul.mubr.msk.f32.vlgmr.msra.gmra.mrb[12].mxu0 %vm1031_vm4, %v2193_v16  ;;  %3434 = vmatprep.subr.msk.bf16.mxu0 %vm3868_vm2, %v3432_v59  ;;  %v847_v16 = vld [vmem:[%s3834_s5 + $0x60] sm:$0xff] }
 0x923   : > { %v2358_v30 = vpop.permute.xlu0 %2357 }
 0x924   : > { %v2374_v33 = vsel %vm2373_vm6, %v2371_v32, %v2358_v30 }
 0x926   : > { %v3585_v18 = vpop.eup %3584 }
 0x927   : > { %v2194_v19 = vmul.f32 %v3585_v18, %v3581_v14  ;;  %3437 = vmatpush3.bf16.xpose.msk.msra.mxu0 %vm3868_vm2, %v3432_v59  ;;  %v3480_v18 = vpack.c.bf16 %v848_v17, %v847_v16 }
 0x928   : > { %3440 = vmatprep.subr.msk.bf16.mxu0 %vm3868_vm2, %v3438_v24 }
 0x929   : > { %3337 = vmatmul.mubr.msk.f32.vlgmr.msra.gmra.mrb[18].mxu1 %vm1031_vm4, %v2194_v19  ;;  %v849_v19 = vld [vmem:[%s3834_s5 + $0x70] sm:$0xff] }
 0x92a   : > { %3449 = vmatpush3.bf16.xpose.msk.msra.mxu1 %vm3868_vm2, %v3444_v54  ;;  %v3486_v21 = vpack.c.bf16 %v850_v20, %v849_v19 }
 0x92f   : > { %3443 = vmatpush3.bf16.xpose.msk.msra.mxu0 %vm3868_vm2, %v3438_v24 }
 0x9f4   : > { %v2267_v25 = vpop.f32.mrb[12].mxu0 }
 0x9f5   : > { %2365 = vrot.lane.b32.xlu0 %v2267_v25, %s3671_s23  ;;  %v3333_v26 = vpop.f32.mrb[13].mxu0 }
 0x9fc   : > { %v2343_v27 = vpop.f32.mrb[18].mxu1 }
 0x9fd   : > { %2367 = vrot.lane.b32.xlu1 %v2343_v27, %s3671_s23  ;;  %v3338_v28 = vpop.f32.mrb[19].mxu1  ;;  %s4299_s23 = sld [smem:[#allocation15_spill]] (!%p3146_p6) }
 0x9fe   : > { %v3124_v28 = vld [vmem:[%s773_s22] ss:$0 sm:$0xff] }
 0xa67   : > { %v2366_v34 = vpop.permute.xlu0 %2365 }
 0xa68   : > { %v2377_v35 = vsel %vm2376_vm5, %v2374_v33, %v2366_v34 }
 0xa69   : > { %3347 = vmatprep.mubr.msk.f32.mxu0 %vm861_vm1, %v2377_v35 }
 0xa6f   : > { %v2368_v39 = vpop.permute.xlu1 %2367 }
 0xa70   : > { %v2378_v40 = vsel %vm2376_vm5, %v2375_v38, %v2368_v39  ;;  %v3492_v38 = vpack.c.bf16 %v853_v37, %v852_v36  ;;  %v854_v39 = vld [vmem:[%s3839_s7 + $0x10] sm:$0xff]  ;;  %v3145_v36 = vld [vmem:[%s792_s0] ss:$0 sm:$0xff]  ;;  %s4298_s0 = sld [smem:[#allocation14_spill]] (!%p3146_p6) }
 0xa71   : > { %3348 = vmatmul.mubr.msk.f32.vlgmr.msra.gmra.mrb[14].mxu0 %vm861_vm1, %v2378_v40  ;;  %v855_v40 = vld [vmem:[%s3839_s7 + $0x18] sm:$0xff] }
 0xa72   : > { %3493 = vmatprep.subr.bf16.mxu0 %v3492_v38 }
 0xa73   : > { %3495 = vmatpush3.bf16.xpose.msra.mxu0 %v3492_v38 }
 0xb44   : > { %v3349_v42 = vpop.f32.mrb[14].mxu0 }
 0xb45   : > { %v2475_v43 = vadd.f32 %v3349_v42, %v3117_v41  ;;  %v2469_v44 = vpop.f32.mrb[15].mxu0  ;;  %v3126_v42 = vld [vmem:[%s784_s17] ss:$0 sm:$0xff] }
 0xb46   : > { %v2470_v45 = vadd.f32 %v3117_v41, %v2469_v44  ;;  %v3496_v41 = vpack.c.bf16 %v855_v40, %v854_v39 }
 0xb47   : > { %v4109_v46 = vadd.f32 %v2475_v43, %v3860_v7  ;;  %v838_v7 = vld [vmem:[%s3834_s5 + $0x18] sm:$0xff] }
 0xb48   : > { %v4112_v47 = vadd.f32 %v2470_v45, %v3858_v5  ;;  %v3450_v57 = vpack.c.bf16 %v838_v7, %v837_v53  ;;  %v839_v5 = vld [vmem:[%s3834_s5 + $0x20] sm:$0xff]  ;;  %3497 = vmatprep.subr.bf16.mxu0 %v3496_v41 }
 0xb49   : > { %v2483_v49 = vsel %vm861_vm1, %v4109_v46, 0.0  ;;  %v3456_v55 = vpack.c.bf16 %v840_v58, %v839_v5  ;;  %3499 = vmatpush3.bf16.xpose.msra.mxu0 %v3496_v41 }
 0xb4a   : > { %2484 = vadd.xlane.f32.xlu1 %v2483_v49  ;;  %v2480_v50 = vsel %vm861_vm1, %v4112_v47, 0.0  ;;  %3452 = vmatprep.subr.msk.bf16.mxu1 %vm3868_vm2, %v3450_v57 }
 0xb4b   : > { %2481 = vadd.xlane.f32.xlu0 %v2480_v50  ;;  %3455 = vmatpush3.bf16.xpose.msk.msra.mxu1 %vm3868_vm2, %v3450_v57 }
 0xb4c   : > { %3458 = vmatprep.subr.msk.bf16.mxu1 %vm3868_vm2, %v3456_v55 }
 0xb53   : > { %3461 = vmatpush3.bf16.xpose.msk.msra.mxu1 %vm3868_vm2, %v3456_v55 }
 0xb54   : > { %3464 = vmatprep.subr.msk.bf16.mxu1 %vm3868_vm2, %v3462_v63 }
 0xb5b   : > { %3467 = vmatpush3.bf16.xpose.msk.msra.mxu1 %vm3868_vm2, %v3462_v63 }
 0xb5c   : > { %3470 = vmatprep.subr.msk.bf16.mxu1 %vm3868_vm2, %v3468_v2 }
 0xb63   : > { %3473 = vmatpush3.bf16.xpose.msk.msra.mxu1 %vm3868_vm2, %v3468_v2 }
 0xb64   : > { %3476 = vmatprep.subr.msk.bf16.mxu1 %vm3868_vm2, %v3474_v56 }
 0xb6b   : > { %3479 = vmatpush3.bf16.xpose.msk.msra.mxu1 %vm3868_vm2, %v3474_v56 }
 0xb6c   : > { %3482 = vmatprep.subr.msk.bf16.mxu1 %vm3868_vm2, %v3480_v18 }
 0xb73   : > { %3485 = vmatpush3.bf16.xpose.msk.msra.mxu1 %vm3868_vm2, %v3480_v18 }
 0xb74   : > { %3488 = vmatprep.subr.msk.bf16.mxu1 %vm3868_vm2, %v3486_v21 }
 0xb7b   : > { %3491 = vmatpush3.bf16.xpose.msk.msra.mxu1 %vm3868_vm2, %v3486_v21 }
 0xbd7   : > { %v2485_v3 = vpop.xlane.xlu1 %2484 }
 0xbd8   : > { %v2487_v4 = vmul.f32 0.03125, %v2485_v3  ;;  %v2482_v6 = vpop.xlane.xlu0 %2481 }
 0xbd9   : > { %v2486_v8 = vmul.f32 0.03125, %v2482_v6 }
 0xbda   : > { %v2489_v9 = vsub.f32 %v4109_v46, %v2487_v4 }
 0xbdb   : > { %v2488_v11 = vsub.f32 %v4112_v47, %v2486_v8 }
 0xbdc   : > { %v2491_v14 = vmul.f32 %v2489_v9, %v2489_v9 }
 0xbdd   : > { %v2490_v12 = vmul.f32 %v2488_v11, %v2488_v11 }
 0xbde   : > { %v2495_v15 = vsel %vm861_vm1, %v2491_v14, 0.0 }
 0xbdf   : > { %v2492_v13 = vsel %vm861_vm1, %v2490_v12, 0.0 }
 0xbe0   : > { %2493 = vadd.xlane.f32.xlu0 %v2492_v13 }
 0xbe4   : > { %2496 = vadd.xlane.f32.xlu0 %v2495_v15 }
 0xc6d   : > { %v2494_v59 = vpop.xlane.xlu0 %2493 }
 0xc6e   : > { %v2498_v22 = vmul.f32 0.03125, %v2494_v59 }
 0xc70   : > { %v2500_v23 = vadd.f32 1e-06, %v2498_v22 }
 0xc71   : > { %v2497_v24 = vpop.xlane.xlu0 %2496 }
 0xc72   : > { %3586 = vrsqrt.f32 %v2500_v23  ;;  %v2499_v25 = vmul.f32 0.03125, %v2497_v24 }
 0xc74   : > { %v2501_v26 = vadd.f32 1e-06, %v2499_v25  ;;  %v3672_v25 = vmov -1.0  }
 0xc76   : > { %3588 = vrsqrt.f32 %v2501_v26 }
 0xc7c   : > { %v3587_v27 = vpop.eup %3586 }
 0xc7d   : > { %v2504_v29 = vmul.f32 %v3587_v27, %v2488_v11 }
 0xc7f   : > { %v2512_v30 = vmul.f32 %v3124_v28, %v2504_v29 }
 0xc80   : > { %v3589_v31 = vpop.eup %3588 }
 0xc81   : > { %v2505_v32 = vmul.f32 %v3589_v31, %v2489_v9  ;;  %v2520_v33 = vadd.f32 %v3125_v10, %v2512_v30 }
 0xc83   : > { %v2513_v34 = vmul.f32 %v3124_v28, %v2505_v32  ;;  %3382 = vmatprep.mubr.msk.f32.mxu1 %vm861_vm1, %v2520_v33 }
 0xc85   : > { %v2521_v35 = vadd.f32 %v3125_v10, %v2513_v34 }
 0xc87   : > { %3383 = vmatmul.mubr.msk.f32.vlgmr.msra.gmra.mrb[20].mxu1 %vm861_vm1, %v2521_v35 }
 0xd5a   : > { %v3384_v43 = vpop.f32.mrb[20].mxu1 }
 0xd5b   : > { %v2654_v44 = vadd.f32 %v3384_v43, %v3126_v42  ;;  %v2648_v45 = vpop.f32.mrb[21].mxu1 }
 0xd5c   : > { %v2649_v49 = vadd.f32 %v3126_v42, %v2648_v45 }
 0xd5d   : > { %v2660_v50 = vmul.f32 0.70710677, %v2654_v44  ;;  %v2658_v33 = vmul.f32 0.5, %v2654_v44 }
 0xd5e   : > { %v2659_v51 = vmul.f32 0.70710677, %v2649_v49  ;;  %v2657_v31 = vmul.f32 0.5, %v2649_v49 }
 0xd5f   : > { %v2666_v52 = vand.u32 2147483647, %v2660_v50  ;;  %vm2662_vm7 = vcmp.ge.f32.partialorder %v2660_v50, 0.0 }
 0xd60   : > { %v2665_v53 = vand.u32 2147483647, %v2659_v51  ;;  %vm2661_vm8 = vcmp.ge.f32.partialorder %v2659_v51, 0.0  ;;  %v2664_v26 = vsel %vm2662_vm7, 1.0, %v3672_v25 }
 0xd61   : > { %v2668_v54 = vmul.f32 0.3275911, %v2666_v52  ;;  %v2694_v58 = vsub.f32 0.0, %v2666_v52  ;;  %v2663_v29 = vsel %vm2661_vm8, 1.0, %v3672_v25 }
 0xd62   : > { %v2667_v7 = vmul.f32 0.3275911, %v2665_v53  ;;  %v2693_v55 = vsub.f32 0.0, %v2665_v53 }
 0xd63   : > { %v2670_v57 = vadd.f32 1.0, %v2668_v54  ;;  %v2696_v62 = vmul.f32 %v2694_v58, %v2666_v52 }
 0xd64   : > { %v2669_v5 = vadd.f32 1.0, %v2667_v7  ;;  %v2695_v1 = vmul.f32 %v2693_v55, %v2665_v53 }
 0xd65   : > { %3590 = vrcp.f32 %v2670_v57  ;;  %v2699_v4 = vmul.f32 1.442695, %v2696_v62 }
 0xd66   : > { %3592 = vrcp.f32 %v2669_v5  ;;  %v2697_v9 = vmul.f32 1.442695, %v2695_v1 }
 0xd67   : > { %3594 = vpow2.f32 %v2699_v4 }
 0xd68   : > { %3596 = vpow2.f32 %v2697_v9 }
 0xd6f   : > { %v3591_v61 = vpop.eup %3590 }
 0xd70   : > { %v3593_v63 = vpop.eup %3592  ;;  %v2676_v0 = vmul.f32 1.0614054, %v3591_v61 }
 0xd71   : > { %v2675_v2 = vmul.f32 1.0614054, %v3593_v63  ;;  %v3595_v20 = vpop.eup %3594 }
 0xd72   : > { %v2678_v3 = vadd.f32 -1.4531521, %v2676_v0  ;;  %v3597_v59 = vpop.eup %3596  ;;  %v3147_v0 = vld [vmem:[%s4298_s0] ss:$0 sm:$0xff] (!%p3146_p6) }
 0xd73   : > { %v2677_v6 = vadd.f32 -1.4531521, %v2675_v2  ;;  %v3148_v2 = vld [vmem:[%s4299_s23] ss:$0 sm:$0xff] (!%p3146_p6) }
 0xd74   : > { %v2680_v8 = vmul.f32 %v3591_v61, %v2678_v3 }
 0xd75   : > { %v2679_v11 = vmul.f32 %v3593_v63, %v2677_v6 }
 0xd76   : > { %v2682_v12 = vadd.f32 1.4214138, %v2680_v8 }
 0xd77   : > { %v2681_v13 = vadd.f32 1.4214138, %v2679_v11 }
 0xd78   : > { %v2684_v14 = vmul.f32 %v3591_v61, %v2682_v12 }
 0xd79   : > { %v2683_v15 = vmul.f32 %v3593_v63, %v2681_v13 }
 0xd7a   : > { %v2686_v60 = vadd.f32 -0.28449672, %v2684_v14 }
 0xd7b   : > { %v2685_v48 = vadd.f32 -0.28449672, %v2683_v15 }
 0xd7c   : > { %v2688_v56 = vmul.f32 %v3591_v61, %v2686_v60 }
 0xd7d   : > { %v2687_v16 = vmul.f32 %v3593_v63, %v2685_v48 }
 0xd7e   : > { %v2690_v17 = vadd.f32 0.2548296, %v2688_v56 }
 0xd7f   : > { %v2689_v18 = vadd.f32 0.2548296, %v2687_v16 }
 0xd80   : > { %v2692_v19 = vmul.f32 %v3591_v61, %v2690_v17 }
 0xd81   : > { %v2691_v21 = vmul.f32 %v3593_v63, %v2689_v18 }
 0xd82   : > { %v2702_v22 = vmul.f32 %v3595_v20, %v2692_v19 }
 0xd83   : > { %v2701_v23 = vmul.f32 %v3597_v59, %v2691_v21 }
 0xd84   : > { %v2704_v24 = vsub.f32 1.0, %v2702_v22 }
 0xd85   : > { %v2703_v27 = vsub.f32 1.0, %v2701_v23 }
 0xd86   : > { %v2706_v28 = vmul.f32 %v2704_v24, %v2664_v26 }
 0xd87   : > { %v2705_v10 = vmul.f32 %v2703_v27, %v2663_v29 }
 0xd88   : > { %v2708_v30 = vadd.f32 1.0, %v2706_v28 }
 0xd89   : > { %v2707_v32 = vadd.f32 1.0, %v2705_v10 }
 0xd8a   : > { %v2710_v35 = vmul.f32 %v2708_v30, %v2658_v33 }
 0xd8b   : > { %v2709_v34 = vmul.f32 %v2707_v32, %v2657_v31 }
 0xd8d   : > { %3393 = vmatprep.mubr.f32.mxu0 %v2709_v34 }
 0xd8e   : > { %3394 = vmatmul.mubr.f32.vlgmr.msra.gmra.mrb[16].mxu0 %v2710_v35 }
 0xe61   : > { %v3395_v37 = vpop.f32.mrb[16].mxu0  ;;  %2799 = sbr.rel (%p3146_p6) target bundleno = 4005 (0xfa5), region = 96 }
 0xe62   : > { %v2789_v38 = vadd.f32 %v3395_v37, %v3145_v36  ;;  %v2783_v39 = vpop.f32.mrb[17].mxu0 }
 0xe63   : > { %v2784_v40 = vadd.f32 %v3145_v36, %v2783_v39 }
 0xe64   : > { %v2793_v41 = vadd.f32 %v2789_v38, %v4109_v46 }
 0xe65   : > { %v2792_v42 = vadd.f32 %v2784_v40, %v4112_v47 }
 0xe66   : > { %2795 = vst.msk [vmem:[#allocation2 + $0x8] sm:$0xff] %vm861_vm1, %v2793_v41  ;;  %v2805_v44 = vsel (!%p3146_p6), %vm861_vm1, %v2793_v41, 0.0 }
 0xe67   : > { %2794 = vst.msk [vmem:[#allocation2] sm:$0xff] %vm861_vm1, %v2792_v42  ;;  %v2802_v43 = vsel (!%p3146_p6), %vm861_vm1, %v2792_v42, 0.0 }
 0xe68   : > { %2803 = vadd.xlane.f32.xlu0 %v2802_v43 }
 0xe6c   : > { %2806 = vadd.xlane.f32.xlu0 %v2805_v44 }
 0xef5   : > { %v2804_v45 = vpop.xlane.xlu0 %2803 }
 0xef6   : > { %v2808_v49 = vmul.f32 0.03125, %v2804_v45 }
 0xef8   : > { %v2810_v50 = vsub.f32 %v2792_v42, %v2808_v49 }
 0xef9   : > { %v2807_v51 = vpop.xlane.xlu0 %2806 }
 0xefa   : > { %v2809_v46 = vmul.f32 0.03125, %v2807_v51  ;;  %v2812_v52 = vmul.f32 %v2810_v50, %v2810_v50 }
 0xefc   : > { %v2811_v47 = vsub.f32 %v2793_v41, %v2809_v46  ;;  %v2814_v53 = vsel %vm861_vm1, %v2812_v52, 0.0 }
 0xefd   : > { %2815 = vadd.xlane.f32.xlu1 %v2814_v53 }
 0xefe   : > { %v2813_v54 = vmul.f32 %v2811_v47, %v2811_v47 }
 0xf00   : > { %v2817_v7 = vsel %vm861_vm1, %v2813_v54, 0.0 }
 0xf01   : > { %2818 = vadd.xlane.f32.xlu1 %v2817_v7 }
 0xf8a   : > { %v2816_v57 = vpop.xlane.xlu1 %2815 }
 0xf8b   : > { %v2820_v5 = vmul.f32 0.03125, %v2816_v57 }
 0xf8d   : > { %v2822_v58 = vadd.f32 1e-06, %v2820_v5 }
 0xf8e   : > { %v2819_v55 = vpop.xlane.xlu1 %2818 }
 0xf8f   : > { %3598 = vrsqrt.f32 %v2822_v58  ;;  %v2821_v61 = vmul.f32 0.03125, %v2819_v55 }
 0xf91   : > { %v2823_v62 = vadd.f32 1e-06, %v2821_v61 }
 0xf93   : > { %3600 = vrsqrt.f32 %v2823_v62 }
 0xf99   : > { %v3599_v63 = vpop.eup %3598 }
 0xf9a   : > { %v2826_v1 = vmul.f32 %v3599_v63, %v2810_v50 }
 0xf9c   : > { %v2834_v3 = vmul.f32 %v3147_v0, %v2826_v1 }
 0xf9d   : > { %v3601_v4 = vpop.eup %3600 }
 0xf9e   : > { %v2842_v6 = vadd.f32 %v3148_v2, %v2834_v3  ;;  %v2827_v8 = vmul.f32 %v3601_v4, %v2811_v47 }
 0xfa0   : > { %2844 = vst.msk [vmem:[#allocation3] sm:$0xff] %vm861_vm1, %v2842_v6  ;;  %v2835_v9 = vmul.f32 %v3147_v0, %v2827_v8 }
 0xfa2   : > { %v2843_v11 = vadd.f32 %v3148_v2, %v2835_v9 }
 0xfa4   : > { %2845 = vst.msk [vmem:[#allocation3 + $0x8] sm:$0xff] %vm861_vm1, %v2843_v11 }
 0xfa5 PF: > { %s4300_s19 = sld [smem:[#allocation7_spill]]  ;;  %s3673_s30 = smov [#allocation3]  }
 0xfa6   : > { %s2855_s5 = sshll.u32 %s3673_s30, 4  ;;  %s2856_s5 = int_to_ptr.vmem [resolvable:$true] %s2855_s5 }
 0xfa7   : > { %s3602_s21 = scalar_lea.vmem %s2856_s5, 256  ;;  %p3609_p11 = scmp.lt.s32.totalorder %s2856_s5, %s2856_s5 }
 0xfa8   : > { %p3603_p8 = scmp.ne.s32.totalorder %s2856_s5, %s3602_s21  ;;  %p3610_p12 = scmp.lt.s32.totalorder %s3602_s21, %s3602_s21 }
 0xfaa   : > { %p3611_p13 = por %p3610_p12, %p3609_p11 }
 0xfab   : > { %s4301_s25 = sadd.s32 4294967295, %s4300_s19  }
 0xfac   : > { %p4215_p7 = scmp.eq.s32.totalorder %s4301_s25, 1 }
 0xfae   : > { %p3604_p9 = pnand %p3603_p8, %p4215_p7 }
 0xfb0   : > { %p3605_p10 = pneg %p3604_p9 }
 0xfb2   : > { %p3612_p0 = pnand %p3611_p13, %p3605_p10 }
 0xfb4   : > { %3615 = shalt.err (!%p3612_p0)
}
 0xfb5   : > { %s4303_s22 = sld [smem:[#allocation16_spill]] }
 0xfbb   : > { %s3616_s7 = scalar_lea.hbm %s4303_s22, 256 }
 0xfbc   : > { %p3617_p1 = scmp.ne.s32.totalorder %s4303_s22, %s3616_s7  ;;  %p3622_p4 = scmp.lt.u32.totalorder %s3616_s7, %s4303_s22 }
 0xfbe   : > { %p3618_p2 = pnand %p3617_p1, %p4215_p7 }
 0xfc0   : > { %p3619_p3 = pneg %p3618_p2 }
 0xfc2   : > { %p3624_p5 = pnand %p3622_p4, %p3619_p3 }
 0xfc4   : > { %3627 = shalt.err (!%p3624_p5)
}
 0xfc5   : > { %s3674_s20 = smov 128  }
 0xfc6   : > { %3502 = dma.vmem_to_hbm [thread:$0]  (%p4215_p7), %s2856_s5, 256, %s4303_s22, [#allocation4], %s3674_s20, %s3674_s20, %s3669_s16  }
 0xfc7   : > { %3641 = dma.done.wait (%p4215_p7), [#allocation4], 256  }
 0xfc8   : > { %3643 = vsyncadd (%p4215_p7), [#allocation4], 4294967040 }
 0xfc9 PF: > { %s4304_s19 = sld [smem:[#allocation7_spill]]  ;;  %s4305_s24 = sld [smem:[#allocation6_spill]] }
 0xfca   : > { %s4306_s25 = sld [smem:[#allocation8_spill]] }
 0xfcf   : > { %s28_s26 = sadd.s32 1, %s4304_s19  }
 0xfd0   : > { %p25_p6 = scmp.ge.s32.totalorder %s28_s26, 4  }
 0xfd2   :  { %27 = sbr.rel (!%p25_p6) target bundleno = 11 (0xb), region = 166 }
 0xfd9   :  { %2871 = vsyncpa [#allocation4], 1 }
 0xfda   :  { %2873 = vsyncpa [#allocation4 + $0x1], 1 }

</bundles_post_ra>
